<compile_context>
chip_gen: v6e
topology: v6e:2x2x1
jax: 0.10.0
libtpu: 0.0.40
codegen_flags: <defaults>
</compile_context>

<pallas_src>
import functools

import jax
import jax.numpy as jnp
from jax.experimental import pallas as pl
from jax.experimental.pallas import tpu as pltpu


# ----------------------------------------------------------------------------
# in-kernel math helpers (operate on plain VMEM values)
# ----------------------------------------------------------------------------
def _gelu_tanh(x):
    # TODO(synk): torch.nn.GELU() uses exact erf; tanh approximation (EUP-friendly)
    # matches to ~1e-3 absolute.
    c = 0.7978845608028654  # sqrt(2/pi)
    return 0.5 * x * (1.0 + jnp.tanh(c * (x + 0.044715 * (x * x * x))))


def _layernorm(x, g, b, eps):
    # x: (S, H) f32, g/b: (1, H) f32
    mu = jnp.mean(x, axis=-1, keepdims=True)
    xc = x - mu
    var = jnp.mean(xc * xc, axis=-1, keepdims=True)
    return xc * jax.lax.rsqrt(var + eps) * g + b


def _multihead_attention(q_ln, kv, wq3, bq3, wkv3, bkv3, wo3, bo, add_mask, num_heads):
    """Head-batched MHA.  q_ln/kv: (S, H) f32.  Weights are per-head:
    wq3 (nh,H,hd) bf16 (scale folded in), wkv3 (2nh,H,hd) bf16 (K heads then V heads),
    wo3 (nh,hd,H) bf16, biases f32.  Returns (S, H) f32 (out_proj output, no residual)."""
    S, H = q_ln.shape
    nh = num_heads
    q_b = jnp.broadcast_to(q_ln.astype(jnp.bfloat16)[None], (nh, S, H))
    kv_b = jnp.broadcast_to(kv.astype(jnp.bfloat16)[None], (2 * nh, S, H))

    # batched projections, leading batch dim = head (same total FLOPs as one fused dot)
    qh = jnp.einsum("hsk,hkd->hsd", q_b, wq3, preferred_element_type=jnp.float32) + bq3
    kvh = jnp.einsum("hsk,hkd->hsd", kv_b, wkv3, preferred_element_type=jnp.float32) + bkv3
    kh = kvh[:nh]
    vh = kvh[nh:]

    s = jnp.einsum("hqd,hkd->hqk", qh.astype(jnp.bfloat16), kh.astype(jnp.bfloat16),
                   preferred_element_type=jnp.float32)
    s = s + add_mask[None, :, :]
    s = s - jnp.max(s, axis=-1, keepdims=True)
    e = jnp.exp(s)
    p = e * pl.reciprocal(jnp.sum(e, axis=-1, keepdims=True), approx=True)

    ctx = jnp.einsum("hqk,hkd->hqd", p.astype(jnp.bfloat16), vh.astype(jnp.bfloat16),
                     preferred_element_type=jnp.float32)                 # (nh, S, hd)
    per_head = jnp.einsum("hsd,hdf->hsf", ctx.astype(jnp.bfloat16), wo3,
                          preferred_element_type=jnp.float32)            # (nh, S, H)
    # concat-heads @ Wo  ==  sum_h ctx_h @ Wo_h   (static unrolled head-sum of tiles)
    out = per_head[0]
    for h in range(1, nh):
        out = out + per_head[h]
    return out + bo


def _pointwise_ffn(x, w1, b1, w2, b2):
    # conv1d(k=1) == per-position linear; residual adds the (layer-normed) FFN input.
    h = jnp.dot(x.astype(jnp.bfloat16), w1, preferred_element_type=jnp.float32) + b1
    h = _gelu_tanh(h)
    h = jnp.dot(h.astype(jnp.bfloat16), w2, preferred_element_type=jnp.float32) + b2
    return h + x


def _layer_body(x, kv, add_mask, keep,
                lnq_g, lnq_b, wq3, bq3, wkv3, bkv3, wo3, bo,
                lnf_g, lnf_b, w1, b1, w2, b2, *, eps, num_heads):
    # torch:  Q = LN_q(Q);  Q = Q + MHA(Q, K, V);  Q = LN_f(Q);  Q = FFN(Q);  Q *= keep
    q_ln = _layernorm(x, lnq_g, lnq_b, eps)
    h = q_ln + _multihead_attention(q_ln, kv, wq3, bq3, wkv3, bkv3, wo3, bo,
                                    add_mask, num_heads)
    y = _layernorm(h, lnf_g, lnf_b, eps)
    y = _pointwise_ffn(y, w1, b1, w2, b2)
    return y * keep


# ----------------------------------------------------------------------------
# Fused per-stack kernels.  grid = (batch, layer); the activation carries across
# the layer axis in a VMEM scratch and is written to HBM only once per batch.
# ----------------------------------------------------------------------------
def _cross_stack_kernel(q_ref, emb_ref, mask_ref, keep_ref, ln1_g_ref, ln1_b_ref,
                        lnq_g_ref, lnq_b_ref, wq_ref, bq_ref, wkv_ref, bkv_ref,
                        wo_ref, bo_ref, lnf_g_ref, lnf_b_ref,
                        w1_ref, b1_ref, w2_ref, b2_ref,
                        o_ref, q_state, kv_state, *, eps, num_heads):
    l = pl.program_id(1)

    @pl.when(l == 0)
    def _init():
        q_state[...] = q_ref[0].astype(jnp.float32)
        # KV source = LN1(input_emb), fixed for every cross layer.
        kv_state[...] = _layernorm(emb_ref[0].astype(jnp.float32),
                                   ln1_g_ref[...], ln1_b_ref[...], eps)

    y = _layer_body(q_state[...], kv_state[...], mask_ref[...], keep_ref[0],
                    lnq_g_ref[0], lnq_b_ref[0], wq_ref[0], bq_ref[0],
                    wkv_ref[0], bkv_ref[0], wo_ref[0], bo_ref[0],
                    lnf_g_ref[0], lnf_b_ref[0], w1_ref[0], b1_ref[0],
                    w2_ref[0], b2_ref[0], eps=eps, num_heads=num_heads)
    q_state[...] = y

    @pl.when(l == pl.num_programs(1) - 1)
    def _finalize():
        o_ref[0] = y.astype(o_ref.dtype)


def _self_stack_kernel(x_ref, mask_ref, keep_ref,
                       lnq_g_ref, lnq_b_ref, lnkv_g_ref, lnkv_b_ref,
                       wq_ref, bq_ref, wkv_ref, bkv_ref, wo_ref, bo_ref,
                       lnf_g_ref, lnf_b_ref, w1_ref, b1_ref, w2_ref, b2_ref,
                       o_ref, x_state, *, eps, num_heads):
    l = pl.program_id(1)

    @pl.when(l == 0)
    def _init():
        x_state[...] = x_ref[0].astype(jnp.float32)

    x = x_state[...]
    # at each self layer, Q and KV are the same carried tensor with different LNs
    kv = _layernorm(x, lnkv_g_ref[0], lnkv_b_ref[0], eps)
    y = _layer_body(x, kv, mask_ref[...], keep_ref[0],
                    lnq_g_ref[0], lnq_b_ref[0], wq_ref[0], bq_ref[0],
                    wkv_ref[0], bkv_ref[0], wo_ref[0], bo_ref[0],
                    lnf_g_ref[0], lnf_b_ref[0], w1_ref[0], b1_ref[0],
                    w2_ref[0], b2_ref[0], eps=eps, num_heads=num_heads)
    x_state[...] = y

    @pl.when(l == pl.num_programs(1) - 1)
    def _finalize():
        o_ref[0] = y.astype(o_ref.dtype)


# ----------------------------------------------------------------------------
# pallas_call wrappers
# ----------------------------------------------------------------------------
def _common_layer_specs(S, H, nh, hd):
    l3 = lambda b, l: (l, 0, 0)
    l4 = lambda b, l: (l, 0, 0, 0)
    return [
        pl.BlockSpec((1, 1, H), l3),            # lnq gamma
        pl.BlockSpec((1, 1, H), l3),            # lnq beta
        pl.BlockSpec((1, nh, H, hd), l4),       # Wq (per-head, scale folded, bf16)
        pl.BlockSpec((1, nh, 1, hd), l4),       # bq
        pl.BlockSpec((1, 2 * nh, H, hd), l4),   # Wk|Wv stacked (bf16)
        pl.BlockSpec((1, 2 * nh, 1, hd), l4),   # bk|bv
        pl.BlockSpec((1, nh, hd, H), l4),       # Wo per head (bf16)
        pl.BlockSpec((1, 1, H), l3),            # bo
        pl.BlockSpec((1, 1, H), l3),            # lnf gamma
        pl.BlockSpec((1, 1, H), l3),            # lnf beta
        pl.BlockSpec((1, H, H), l3),            # W1 (bf16)
        pl.BlockSpec((1, 1, H), l3),            # b1
        pl.BlockSpec((1, H, H), l3),            # W2 (bf16)
        pl.BlockSpec((1, 1, H), l3),            # b2
    ]


_COMMON_NAMES = ("lnq_g", "lnq_b", "wq3", "bq3", "wkv3", "bkv3", "wo3", "bo",
                 "lnf_g", "lnf_b", "w1", "b1", "w2", "b2")

_COMPILER_PARAMS = pltpu.CompilerParams(
    dimension_semantics=("parallel", "arbitrary"),   # batch across cores, layers serial
    vmem_limit_bytes=32 * 1024 * 1024,               # safe on v5e/v6e/v7x
)


def _run_cross_stack(Q, input_emb, ln1_g, ln1_b, stacked, add_mask, keep, *, eps, num_heads):
    B, S, H = Q.shape
    L = stacked["wq3"].shape[0]
    nh = num_heads
    hd = H // nh
    bmap = lambda b, l: (b, 0, 0)
    c2 = lambda b, l: (0, 0)

    in_specs = [
        pl.BlockSpec((1, S, H), bmap),   # Q (initial carry)
        pl.BlockSpec((1, S, H), bmap),   # raw input_emb (LN1'd in-kernel at l == 0)
        pl.BlockSpec((S, S), c2),        # additive attention mask
        pl.BlockSpec((1, S, 1), bmap),   # timeline keep mask
        pl.BlockSpec((1, H), c2),        # ln1 gamma
        pl.BlockSpec((1, H), c2),        # ln1 beta
    ] + _common_layer_specs(S, H, nh, hd)

    return pl.pallas_call(
        functools.partial(_cross_stack_kernel, eps=eps, num_heads=nh),
        out_shape=jax.ShapeDtypeStruct((B, S, H), jnp.float32),
        grid=(B, L),
        in_specs=in_specs,
        out_specs=pl.BlockSpec((1, S, H), bmap),
        scratch_shapes=[pltpu.VMEM((S, H), jnp.float32),     # carried Q
                        pltpu.VMEM((S, H), jnp.float32)],    # LN1(input_emb)
        compiler_params=_COMPILER_PARAMS,
    )(Q, input_emb, add_mask, keep, ln1_g, ln1_b,
      *[stacked[n] for n in _COMMON_NAMES])


def _run_self_stack(x, stacked, add_mask, keep, *, eps, num_heads):
    B, S, H = x.shape
    L = stacked["wq3"].shape[0]
    nh = num_heads
    hd = H // nh
    bmap = lambda b, l: (b, 0, 0)
    c2 = lambda b, l: (0, 0)
    l3 = lambda b, l: (l, 0, 0)

    in_specs = [
        pl.BlockSpec((1, S, H), bmap),   # carried activation (initial)
        pl.BlockSpec((S, S), c2),        # additive attention mask
        pl.BlockSpec((1, S, 1), bmap),   # timeline keep mask
        pl.BlockSpec((1, 1, H), l3),     # lnq gamma
        pl.BlockSpec((1, 1, H), l3),     # lnq beta
        pl.BlockSpec((1, 1, H), l3),     # lnkv gamma
        pl.BlockSpec((1, 1, H), l3),     # lnkv beta
    ] + _common_layer_specs(S, H, nh, hd)[2:]   # reuse attn/ffn weight specs

    return pl.pallas_call(
        functools.partial(_self_stack_kernel, eps=eps, num_heads=nh),
        out_shape=jax.ShapeDtypeStruct((B, S, H), jnp.float32),
        grid=(B, L),
        in_specs=in_specs,
        out_specs=pl.BlockSpec((1, S, H), bmap),
        scratch_shapes=[pltpu.VMEM((S, H), jnp.float32)],    # carried activation
        compiler_params=_COMPILER_PARAMS,
    )(x, add_mask, keep,
      stacked["lnq_g"], stacked["lnq_b"], stacked["lnkv_g"], stacked["lnkv_b"],
      *[stacked[n] for n in _COMMON_NAMES[2:]])


# ----------------------------------------------------------------------------
# Full forward pass (2 pallas_calls total; mask conversion is trivial wrapper glue)
# ----------------------------------------------------------------------------
def crossmodal_transformer_forward(params, Q, input_emb, timeline_mask, attention_mask,
                                   *, eps, n_heads, nc_heads):
    # nn.MultiheadAttention bool attn_mask: True => disallowed (additive -inf).
    add_mask = jnp.where(attention_mask, jnp.float32(-1e30), jnp.float32(0.0))
    # torch applies the timeline mask multiplicatively after the FFN only (no
    # key_padding_mask is passed to MHA) -- reproduced exactly.
    keep = (~timeline_mask).astype(jnp.float32)[:, :, None]            # (B, S, 1)

    x = Q
    if params["cross"] is not None:
        x = _run_cross_stack(x, input_emb, params["ln1_g"], params["ln1_b"],
                             params["cross"], add_mask, keep, eps=eps, num_heads=nc_heads)
    if params["self"] is not None:
        x = _run_self_stack(x, params["self"], add_mask, keep, eps=eps, num_heads=n_heads)
    return x


# ----------------------------------------------------------------------------
# Parameters: torch-like (in, out) layout init + one-time prep into the kernel
# layout (per-head bf16 weights, scale folded into Wq/bq, stacked over layers).
# ----------------------------------------------------------------------------
def init_raw_params(key, H, nc_layers, n_layers):
    def layer_params(k, with_kv_ln):
        ks = jax.random.split(k, 9)
        s = 0.05
        p = dict(
            lnq_g=jnp.ones((1, H), jnp.float32), lnq_b=jnp.zeros((1, H), jnp.float32),
            lnf_g=jnp.ones((1, H), jnp.float32), lnf_b=jnp.zeros((1, H), jnp.float32),
            wq_t=s * jax.random.normal(ks[0], (H, H), jnp.float32),
            wk_t=s * jax.random.normal(ks[1], (H, H), jnp.float32),
            wv_t=s * jax.random.normal(ks[2], (H, H), jnp.float32),
            wo_t=s * jax.random.normal(ks[3], (H, H), jnp.float32),
            bq=s * jax.random.normal(ks[4], (1, H), jnp.float32),
            bk=s * jax.random.normal(ks[5], (1, H), jnp.float32),
            bv=s * jax.random.normal(ks[6], (1, H), jnp.float32),
            bo=jnp.zeros((1, H), jnp.float32),
            w1_t=s * jax.random.normal(ks[7], (H, H), jnp.float32),
            b1=jnp.zeros((1, H), jnp.float32),
            w2_t=s * jax.random.normal(ks[8], (H, H), jnp.float32),
            b2=jnp.zeros((1, H), jnp.float32),
        )
        if with_kv_ln:
            p["lnkv_g"] = jnp.ones((1, H), jnp.float32)
            p["lnkv_b"] = jnp.zeros((1, H), jnp.float32)
        return p

    kc, ks_ = jax.random.split(key, 2)
    cross = [layer_params(k, False) for k in jax.random.split(kc, max(nc_layers, 1))[:nc_layers]]
    selfl = [layer_params(k, True) for k in jax.random.split(ks_, max(n_layers, 1))[:n_layers]]
    return dict(ln1_g=jnp.ones((1, H), jnp.float32),
                ln1_b=jnp.zeros((1, H), jnp.float32),
                cross=cross, self=selfl)


def prepare_params(raw, H, nc_heads, n_heads):
    def prep_layer(lp, nh):
        assert H % nh == 0
        hd = H // nh
        scale = 1.0 / float(hd) ** 0.5

        def split_heads(w_t):   # (H, H) (in, out) -> (nh, H, hd)
            return w_t.reshape(H, nh, hd).transpose(1, 0, 2)

        out = dict(
            lnq_g=lp["lnq_g"], lnq_b=lp["lnq_b"],
            lnf_g=lp["lnf_g"], lnf_b=lp["lnf_b"],
            wq3=(split_heads(lp["wq_t"]) * scale).astype(jnp.bfloat16),
            bq3=(lp["bq"] * scale).reshape(nh, 1, hd),
            wkv3=jnp.concatenate([split_heads(lp["wk_t"]),
                                  split_heads(lp["wv_t"])], axis=0).astype(jnp.bfloat16),
            bkv3=jnp.concatenate([lp["bk"].reshape(nh, 1, hd),
                                  lp["bv"].reshape(nh, 1, hd)], axis=0),
            wo3=lp["wo_t"].reshape(nh, hd, H).astype(jnp.bfloat16),
            bo=lp["bo"],
            w1=lp["w1_t"].astype(jnp.bfloat16), b1=lp["b1"],
            w2=lp["w2_t"].astype(jnp.bfloat16), b2=lp["b2"],
        )
        if "lnkv_g" in lp:
            out["lnkv_g"] = lp["lnkv_g"]
            out["lnkv_b"] = lp["lnkv_b"]
        return out

    def stack(layers, names):
        return {n: jnp.stack([l[n] for l in layers], axis=0) for n in names}

    cross_prep = [prep_layer(lp, nc_heads) for lp in raw["cross"]]
    self_prep = [prep_layer(lp, n_heads) for lp in raw["self"]]
    cross_stacked = stack(cross_prep, _COMMON_NAMES) if cross_prep else None
    self_stacked = (stack(self_prep, _COMMON_NAMES + ("lnkv_g", "lnkv_b"))
                    if self_prep else None)
    return dict(ln1_g=raw["ln1_g"], ln1_b=raw["ln1_b"],
                cross=cross_stacked, self=self_stacked)


if __name__ == "__main__":
    B, S, H = 2, 8, 32
    n_layers, nc_layers = 2, 1
    n_heads, nc_heads = 4, 2
    eps = 1e-8

    key = jax.random.PRNGKey(0)
    kq, ke, kp = jax.random.split(key, 3)
    Q = jax.random.normal(kq, (B, S, H), jnp.float32)
    input_emb = jax.random.normal(ke, (B, S, H), jnp.float32)
    # timeline_mask: True = padded position (gets zeroed, like the torch code)
    timeline_mask = jnp.arange(S)[None, :] >= jnp.array([S, S - 3])[:, None]
    # attention_mask: bool causal mask, True = masked (SASRec-style ~tril)
    attention_mask = ~jnp.tril(jnp.ones((S, S), dtype=bool))

    raw = init_raw_params(kp, H, nc_layers, n_layers)
    params = prepare_params(raw, H, nc_heads, n_heads)

    fwd = jax.jit(functools.partial(
        crossmodal_transformer_forward, eps=eps, n_heads=n_heads, nc_heads=nc_heads))
    out = fwd(params, Q, input_emb, timeline_mask, attention_mask)
    jax.block_until_ready(out)

    assert out.shape == (B, S, H), out.shape
    assert bool(jnp.isfinite(out).all()), "non-finite output"
    print("KERNEL_OK")
</pallas_src>

<mosaic_0001>
module attributes {stable_mosaic.version = 11 : i64} {
  func.func @_self_stack_kernel(%arg0: i32, %arg1: i32, %arg2: memref<1x8x32xf32, #tpu.memory_space<vmem>>, %arg3: memref<8x8xf32, #tpu.memory_space<vmem>>, %arg4: memref<1x8x1xf32, #tpu.memory_space<vmem>>, %arg5: memref<1x1x32xf32, #tpu.memory_space<vmem>>, %arg6: memref<1x1x32xf32, #tpu.memory_space<vmem>>, %arg7: memref<1x1x32xf32, #tpu.memory_space<vmem>>, %arg8: memref<1x1x32xf32, #tpu.memory_space<vmem>>, %arg9: memref<1x4x32x8xbf16, #tpu.memory_space<vmem>>, %arg10: memref<1x4x1x8xf32, #tpu.memory_space<vmem>>, %arg11: memref<1x8x32x8xbf16, #tpu.memory_space<vmem>>, %arg12: memref<1x8x1x8xf32, #tpu.memory_space<vmem>>, %arg13: memref<1x4x8x32xbf16, #tpu.memory_space<vmem>>, %arg14: memref<1x1x32xf32, #tpu.memory_space<vmem>>, %arg15: memref<1x1x32xf32, #tpu.memory_space<vmem>>, %arg16: memref<1x1x32xf32, #tpu.memory_space<vmem>>, %arg17: memref<1x32x32xbf16, #tpu.memory_space<vmem>>, %arg18: memref<1x1x32xf32, #tpu.memory_space<vmem>>, %arg19: memref<1x32x32xbf16, #tpu.memory_space<vmem>>, %arg20: memref<1x1x32xf32, #tpu.memory_space<vmem>>, %arg21: memref<1x8x32xf32, #tpu.memory_space<vmem>>, %arg22: memref<8x32xf32, #tpu.memory_space<vmem>>) attributes {dimension_semantics = [#tpu.dimension_semantics<parallel>, #tpu.dimension_semantics<arbitrary>], iteration_bounds = array<i64: 2, 2>, scalar_prefetch = 0 : i64, scratch_operands = 1 : i64, tpu.core_type = #tpu.core_type<tc>, window_params = [{transform_indices = @transform_0, window_bounds = array<i64: 1, 8, 32>}, {pipeline_mode = #tpu.pipeline_mode<synchronous>, transform_indices = @transform_1, window_bounds = array<i64: 8, 8>}, {transform_indices = @transform_2, window_bounds = array<i64: 1, 8, 1>}, {transform_indices = @transform_3, window_bounds = array<i64: 1, 1, 32>}, {transform_indices = @transform_4, window_bounds = array<i64: 1, 1, 32>}, {transform_indices = @transform_5, window_bounds = array<i64: 1, 1, 32>}, {transform_indices = @transform_6, window_bounds = array<i64: 1, 1, 32>}, {transform_indices = @transform_7, window_bounds = array<i64: 1, 4, 32, 8>}, {transform_indices = @transform_8, window_bounds = array<i64: 1, 4, 1, 8>}, {transform_indices = @transform_9, window_bounds = array<i64: 1, 8, 32, 8>}, {transform_indices = @transform_10, window_bounds = array<i64: 1, 8, 1, 8>}, {transform_indices = @transform_11, window_bounds = array<i64: 1, 4, 8, 32>}, {transform_indices = @transform_12, window_bounds = array<i64: 1, 1, 32>}, {transform_indices = @transform_13, window_bounds = array<i64: 1, 1, 32>}, {transform_indices = @transform_14, window_bounds = array<i64: 1, 1, 32>}, {transform_indices = @transform_15, window_bounds = array<i64: 1, 32, 32>}, {transform_indices = @transform_16, window_bounds = array<i64: 1, 1, 32>}, {transform_indices = @transform_17, window_bounds = array<i64: 1, 32, 32>}, {transform_indices = @transform_18, window_bounds = array<i64: 1, 1, 32>}, {transform_indices = @transform_19, window_bounds = array<i64: 1, 8, 32>}]} {
    %c0_i32 = arith.constant 0 : i32
    %0 = arith.cmpi eq, %arg1, %c0_i32 : i32
    %1 = arith.extui %0 : i1 to i32
    %c0_i32_0 = arith.constant 0 : i32
    %2 = arith.cmpi ne, %1, %c0_i32_0 : i32
    scf.if %2 {
      %c0_90 = arith.constant 0 : index
      %c0_91 = arith.constant 0 : index
      %c0_92 = arith.constant 0 : index
      %178 = vector.load %arg2[%c0_90, %c0_91, %c0_92] : memref<1x8x32xf32, #tpu.memory_space<vmem>>, vector<1x8x32xf32>
      %179 = vector.shape_cast %178 : vector<1x8x32xf32> to vector<8x32xf32>
      %c0_93 = arith.constant 0 : index
      %c0_94 = arith.constant 0 : index
      %180 = vector.load %arg22[%c0_93, %c0_94] : memref<8x32xf32, #tpu.memory_space<vmem>>, vector<8x32xf32>
      tpu.vector_store %arg22[%c0_93, %c0_94], %179 {strides = array<i32>} : memref<8x32xf32, #tpu.memory_space<vmem>>, vector<8x32xf32>,
    } else {
    }
    %c0 = arith.constant 0 : index
    %c0_1 = arith.constant 0 : index
    %3 = vector.load %arg22[%c0, %c0_1] : memref<8x32xf32, #tpu.memory_space<vmem>>, vector<8x32xf32>
    %c0_2 = arith.constant 0 : index
    %c0_3 = arith.constant 0 : index
    %c0_4 = arith.constant 0 : index
    %4 = vector.load %arg7[%c0_2, %c0_3, %c0_4] : memref<1x1x32xf32, #tpu.memory_space<vmem>>, vector<1x1x32xf32>
    %5 = vector.shape_cast %4 : vector<1x1x32xf32> to vector<1x32xf32>
    %c0_5 = arith.constant 0 : index
    %c0_6 = arith.constant 0 : index
    %c0_7 = arith.constant 0 : index
    %6 = vector.load %arg8[%c0_5, %c0_6, %c0_7] : memref<1x1x32xf32, #tpu.memory_space<vmem>>, vector<1x1x32xf32>
    %7 = vector.shape_cast %6 : vector<1x1x32xf32> to vector<1x32xf32>
    %cst = arith.constant dense<0.000000e+00> : vector<8xf32>
    %8 = vector.multi_reduction <add>, %3, %cst [1] : vector<8x32xf32> to vector<8xf32>
    %9 = vector.shape_cast %8 : vector<8xf32> to vector<8x1xf32>
    %cst_8 = arith.constant 3.200000e+01 : f32
    %10 = vector.broadcast %cst_8 : f32 to vector<8x1xf32>
    %11 = arith.divf %9, %10 : vector<8x1xf32>
    %12 = vector.broadcast %11 : vector<8x1xf32> to vector<8x32xf32>
    %13 = arith.subf %3, %12 : vector<8x32xf32>
    %14 = arith.mulf %13, %13 : vector<8x32xf32>
    %cst_9 = arith.constant dense<0.000000e+00> : vector<8xf32>
    %15 = vector.multi_reduction <add>, %14, %cst_9 [1] : vector<8x32xf32> to vector<8xf32>
    %16 = vector.shape_cast %15 : vector<8xf32> to vector<8x1xf32>
    %cst_10 = arith.constant 3.200000e+01 : f32
    %17 = vector.broadcast %cst_10 : f32 to vector<8x1xf32>
    %18 = arith.divf %16, %17 : vector<8x1xf32>
    %cst_11 = arith.constant 9.99999993E-9 : f32
    %19 = vector.broadcast %cst_11 : f32 to vector<8x1xf32>
    %20 = arith.addf %18, %19 : vector<8x1xf32>
    %21 = math.rsqrt %20 : vector<8x1xf32>
    %22 = vector.broadcast %21 : vector<8x1xf32> to vector<8x32xf32>
    %23 = arith.mulf %13, %22 : vector<8x32xf32>
    %24 = vector.broadcast %5 : vector<1x32xf32> to vector<8x32xf32>
    %25 = arith.mulf %23, %24 : vector<8x32xf32>
    %26 = vector.broadcast %7 : vector<1x32xf32> to vector<8x32xf32>
    %27 = arith.addf %25, %26 : vector<8x32xf32>
    %c0_12 = arith.constant 0 : index
    %c0_13 = arith.constant 0 : index
    %28 = vector.load %arg3[%c0_12, %c0_13] : memref<8x8xf32, #tpu.memory_space<vmem>>, vector<8x8xf32>
    %c0_14 = arith.constant 0 : index
    %c0_15 = arith.constant 0 : index
    %c0_16 = arith.constant 0 : index
    %29 = vector.load %arg4[%c0_14, %c0_15, %c0_16] : memref<1x8x1xf32, #tpu.memory_space<vmem>>, vector<1x8x1xf32>
    %30 = vector.shape_cast %29 : vector<1x8x1xf32> to vector<8x1xf32>
    %c0_17 = arith.constant 0 : index
    %c0_18 = arith.constant 0 : index
    %c0_19 = arith.constant 0 : index
    %31 = vector.load %arg5[%c0_17, %c0_18, %c0_19] : memref<1x1x32xf32, #tpu.memory_space<vmem>>, vector<1x1x32xf32>
    %32 = vector.shape_cast %31 : vector<1x1x32xf32> to vector<1x32xf32>
    %c0_20 = arith.constant 0 : index
    %c0_21 = arith.constant 0 : index
    %c0_22 = arith.constant 0 : index
    %33 = vector.load %arg6[%c0_20, %c0_21, %c0_22] : memref<1x1x32xf32, #tpu.memory_space<vmem>>, vector<1x1x32xf32>
    %34 = vector.shape_cast %33 : vector<1x1x32xf32> to vector<1x32xf32>
    %c0_23 = arith.constant 0 : index
    %c0_24 = arith.constant 0 : index
    %c0_25 = arith.constant 0 : index
    %c0_26 = arith.constant 0 : index
    %35 = vector.load %arg9[%c0_23, %c0_24, %c0_25, %c0_26] : memref<1x4x32x8xbf16, #tpu.memory_space<vmem>>, vector<1x4x32x8xbf16>
    %36 = vector.shape_cast %35 : vector<1x4x32x8xbf16> to vector<4x32x8xbf16>
    %c0_27 = arith.constant 0 : index
    %c0_28 = arith.constant 0 : index
    %c0_29 = arith.constant 0 : index
    %c0_30 = arith.constant 0 : index
    %37 = vector.load %arg10[%c0_27, %c0_28, %c0_29, %c0_30] : memref<1x4x1x8xf32, #tpu.memory_space<vmem>>, vector<1x4x1x8xf32>
    %38 = vector.shape_cast %37 : vector<1x4x1x8xf32> to vector<4x1x8xf32>
    %c0_31 = arith.constant 0 : index
    %c0_32 = arith.constant 0 : index
    %c0_33 = arith.constant 0 : index
    %c0_34 = arith.constant 0 : index
    %39 = vector.load %arg11[%c0_31, %c0_32, %c0_33, %c0_34] : memref<1x8x32x8xbf16, #tpu.memory_space<vmem>>, vector<1x8x32x8xbf16>
    %40 = vector.shape_cast %39 : vector<1x8x32x8xbf16> to vector<8x32x8xbf16>
    %c0_35 = arith.constant 0 : index
    %c0_36 = arith.constant 0 : index
    %c0_37 = arith.constant 0 : index
    %c0_38 = arith.constant 0 : index
    %41 = vector.load %arg12[%c0_35, %c0_36, %c0_37, %c0_38] : memref<1x8x1x8xf32, #tpu.memory_space<vmem>>, vector<1x8x1x8xf32>
    %42 = vector.shape_cast %41 : vector<1x8x1x8xf32> to vector<8x1x8xf32>
    %c0_39 = arith.constant 0 : index
    %c0_40 = arith.constant 0 : index
    %c0_41 = arith.constant 0 : index
    %c0_42 = arith.constant 0 : index
    %43 = vector.load %arg13[%c0_39, %c0_40, %c0_41, %c0_42] : memref<1x4x8x32xbf16, #tpu.memory_space<vmem>>, vector<1x4x8x32xbf16>
    %44 = vector.shape_cast %43 : vector<1x4x8x32xbf16> to vector<4x8x32xbf16>
    %c0_43 = arith.constant 0 : index
    %c0_44 = arith.constant 0 : index
    %c0_45 = arith.constant 0 : index
    %45 = vector.load %arg14[%c0_43, %c0_44, %c0_45] : memref<1x1x32xf32, #tpu.memory_space<vmem>>, vector<1x1x32xf32>
    %46 = vector.shape_cast %45 : vector<1x1x32xf32> to vector<1x32xf32>
    %c0_46 = arith.constant 0 : index
    %c0_47 = arith.constant 0 : index
    %c0_48 = arith.constant 0 : index
    %47 = vector.load %arg15[%c0_46, %c0_47, %c0_48] : memref<1x1x32xf32, #tpu.memory_space<vmem>>, vector<1x1x32xf32>
    %48 = vector.shape_cast %47 : vector<1x1x32xf32> to vector<1x32xf32>
    %c0_49 = arith.constant 0 : index
    %c0_50 = arith.constant 0 : index
    %c0_51 = arith.constant 0 : index
    %49 = vector.load %arg16[%c0_49, %c0_50, %c0_51] : memref<1x1x32xf32, #tpu.memory_space<vmem>>, vector<1x1x32xf32>
    %50 = vector.shape_cast %49 : vector<1x1x32xf32> to vector<1x32xf32>
    %c0_52 = arith.constant 0 : index
    %c0_53 = arith.constant 0 : index
    %c0_54 = arith.constant 0 : index
    %51 = vector.load %arg17[%c0_52, %c0_53, %c0_54] : memref<1x32x32xbf16, #tpu.memory_space<vmem>>, vector<1x32x32xbf16>
    %52 = vector.shape_cast %51 : vector<1x32x32xbf16> to vector<32x32xbf16>
    %c0_55 = arith.constant 0 : index
    %c0_56 = arith.constant 0 : index
    %c0_57 = arith.constant 0 : index
    %53 = vector.load %arg18[%c0_55, %c0_56, %c0_57] : memref<1x1x32xf32, #tpu.memory_space<vmem>>, vector<1x1x32xf32>
    %54 = vector.shape_cast %53 : vector<1x1x32xf32> to vector<1x32xf32>
    %c0_58 = arith.constant 0 : index
    %c0_59 = arith.constant 0 : index
    %c0_60 = arith.constant 0 : index
    %55 = vector.load %arg19[%c0_58, %c0_59, %c0_60] : memref<1x32x32xbf16, #tpu.memory_space<vmem>>, vector<1x32x32xbf16>
    %56 = vector.shape_cast %55 : vector<1x32x32xbf16> to vector<32x32xbf16>
    %c0_61 = arith.constant 0 : index
    %c0_62 = arith.constant 0 : index
    %c0_63 = arith.constant 0 : index
    %57 = vector.load %arg20[%c0_61, %c0_62, %c0_63] : memref<1x1x32xf32, #tpu.memory_space<vmem>>, vector<1x1x32xf32>
    %58 = vector.shape_cast %57 : vector<1x1x32xf32> to vector<1x32xf32>
    %cst_64 = arith.constant dense<0.000000e+00> : vector<8xf32>
    %59 = vector.multi_reduction <add>, %3, %cst_64 [1] : vector<8x32xf32> to vector<8xf32>
    %60 = vector.shape_cast %59 : vector<8xf32> to vector<8x1xf32>
    %cst_65 = arith.constant 3.200000e+01 : f32
    %61 = vector.broadcast %cst_65 : f32 to vector<8x1xf32>
    %62 = arith.divf %60, %61 : vector<8x1xf32>
    %63 = vector.broadcast %62 : vector<8x1xf32> to vector<8x32xf32>
    %64 = arith.subf %3, %63 : vector<8x32xf32>
    %65 = arith.mulf %64, %64 : vector<8x32xf32>
    %cst_66 = arith.constant dense<0.000000e+00> : vector<8xf32>
    %66 = vector.multi_reduction <add>, %65, %cst_66 [1] : vector<8x32xf32> to vector<8xf32>
    %67 = vector.shape_cast %66 : vector<8xf32> to vector<8x1xf32>
    %cst_67 = arith.constant 3.200000e+01 : f32
    %68 = vector.broadcast %cst_67 : f32 to vector<8x1xf32>
    %69 = arith.divf %67, %68 : vector<8x1xf32>
    %cst_68 = arith.constant 9.99999993E-9 : f32
    %70 = vector.broadcast %cst_68 : f32 to vector<8x1xf32>
    %71 = arith.addf %69, %70 : vector<8x1xf32>
    %72 = math.rsqrt %71 : vector<8x1xf32>
    %73 = vector.broadcast %72 : vector<8x1xf32> to vector<8x32xf32>
    %74 = arith.mulf %64, %73 : vector<8x32xf32>
    %75 = vector.broadcast %32 : vector<1x32xf32> to vector<8x32xf32>
    %76 = arith.mulf %74, %75 : vector<8x32xf32>
    %77 = vector.broadcast %34 : vector<1x32xf32> to vector<8x32xf32>
    %78 = arith.addf %76, %77 : vector<8x32xf32>
    %79 = arith.truncf %78 : vector<8x32xf32> to vector<8x32xbf16>
    %80 = vector.shape_cast %79 : vector<8x32xbf16> to vector<1x8x32xbf16>
    %81 = vector.shape_cast %80 : vector<1x8x32xbf16> to vector<1x8x32xbf16>
    %82 = vector.broadcast %81 : vector<1x8x32xbf16> to vector<4x8x32xbf16>
    %83 = arith.truncf %27 : vector<8x32xf32> to vector<8x32xbf16>
    %84 = vector.shape_cast %83 : vector<8x32xbf16> to vector<1x8x32xbf16>
    %85 = vector.shape_cast %84 : vector<1x8x32xbf16> to vector<1x8x32xbf16>
    %86 = vector.broadcast %85 : vector<1x8x32xbf16> to vector<8x8x32xbf16>
    "tpu.trace_start"() <{level = 10 : i32, message = "hsk,hkd->hsd"}> : () -> ()
    %cst_69 = arith.constant dense<0.000000e+00> : vector<4x8x8xf32>
    %87 = tpu.matmul %82, %36, %cst_69 {dimension_numbers = #tpu.dot_dimension_numbers<[2], [1], [1], [2], [0, 0, 0, 1, 1, 2], [0], [0]>} : vector<4x8x32xbf16>, vector<4x32x8xbf16>, vector<4x8x8xf32> -> vector<4x8x8xf32>
    "tpu.trace_stop"() : () -> ()
    %88 = vector.broadcast %38 : vector<4x1x8xf32> to vector<4x8x8xf32>
    %89 = arith.addf %87, %88 : vector<4x8x8xf32>
    "tpu.trace_start"() <{level = 10 : i32, message = "hsk,hkd->hsd"}> : () -> ()
    %cst_70 = arith.constant dense<0.000000e+00> : vector<8x8x8xf32>
    %90 = tpu.matmul %86, %40, %cst_70 {dimension_numbers = #tpu.dot_dimension_numbers<[2], [1], [1], [2], [0, 0, 0, 1, 1, 2], [0], [0]>} : vector<8x8x32xbf16>, vector<8x32x8xbf16>, vector<8x8x8xf32> -> vector<8x8x8xf32>
    "tpu.trace_stop"() : () -> ()
    %91 = vector.broadcast %42 : vector<8x1x8xf32> to vector<8x8x8xf32>
    %92 = arith.addf %90, %91 : vector<8x8x8xf32>
    %93 = vector.extract_strided_slice %92 {offsets = [0, 0, 0], sizes = [4, 8, 8], strides = [1, 1, 1]} : vector<8x8x8xf32> to vector<4x8x8xf32>
    %94 = vector.extract_strided_slice %92 {offsets = [4, 0, 0], sizes = [4, 8, 8], strides = [1, 1, 1]} : vector<8x8x8xf32> to vector<4x8x8xf32>
    %95 = arith.truncf %89 : vector<4x8x8xf32> to vector<4x8x8xbf16>
    %96 = arith.truncf %93 : vector<4x8x8xf32> to vector<4x8x8xbf16>
    "tpu.trace_start"() <{level = 10 : i32, message = "hqd,hkd->hqk"}> : () -> ()
    %cst_71 = arith.constant dense<0.000000e+00> : vector<4x8x8xf32>
    %97 = tpu.matmul %95, %96, %cst_71 {dimension_numbers = #tpu.dot_dimension_numbers<[2], [2], [1], [1], [0, 0, 0, 1, 1, 1], [0], [0]>} : vector<4x8x8xbf16>, vector<4x8x8xbf16>, vector<4x8x8xf32> -> vector<4x8x8xf32>
    "tpu.trace_stop"() : () -> ()
    %98 = vector.shape_cast %28 : vector<8x8xf32> to vector<1x8x8xf32>
    %99 = vector.broadcast %98 : vector<1x8x8xf32> to vector<4x8x8xf32>
    %100 = arith.addf %97, %99 : vector<4x8x8xf32>
    %cst_72 = arith.constant dense<0xFF800000> : vector<4x8xf32>
    %101 = vector.multi_reduction <maximumf>, %100, %cst_72 [2] : vector<4x8x8xf32> to vector<4x8xf32>
    %102 = vector.shape_cast %101 : vector<4x8xf32> to vector<4x8x1xf32>
    %103 = vector.broadcast %102 : vector<4x8x1xf32> to vector<4x8x8xf32>
    %104 = arith.subf %100, %103 : vector<4x8x8xf32>
    %105 = math.exp %104 : vector<4x8x8xf32>
    %cst_73 = arith.constant dense<0.000000e+00> : vector<4x8xf32>
    %106 = vector.multi_reduction <add>, %105, %cst_73 [2] : vector<4x8x8xf32> to vector<4x8xf32>
    %107 = vector.shape_cast %106 : vector<4x8xf32> to vector<4x8x1xf32>
    %108 = tpu.reciprocal %107 {approx = true} : vector<4x8x1xf32> -> vector<4x8x1xf32>
    %109 = vector.broadcast %108 : vector<4x8x1xf32> to vector<4x8x8xf32>
    %110 = arith.mulf %105, %109 : vector<4x8x8xf32>
    %111 = arith.truncf %110 : vector<4x8x8xf32> to vector<4x8x8xbf16>
    %112 = arith.truncf %94 : vector<4x8x8xf32> to vector<4x8x8xbf16>
    "tpu.trace_start"() <{level = 10 : i32, message = "hqk,hkd->hqd"}> : () -> ()
    %cst_74 = arith.constant dense<0.000000e+00> : vector<4x8x8xf32>
    %113 = tpu.matmul %111, %112, %cst_74 {dimension_numbers = #tpu.dot_dimension_numbers<[2], [1], [1], [2], [0, 0, 0, 1, 1, 2], [0], [0]>} : vector<4x8x8xbf16>, vector<4x8x8xbf16>, vector<4x8x8xf32> -> vector<4x8x8xf32>
    "tpu.trace_stop"() : () -> ()
    %114 = arith.truncf %113 : vector<4x8x8xf32> to vector<4x8x8xbf16>
    "tpu.trace_start"() <{level = 10 : i32, message = "hsd,hdf->hsf"}> : () -> ()
    %cst_75 = arith.constant dense<0.000000e+00> : vector<4x8x32xf32>
    %115 = tpu.matmul %114, %44, %cst_75 {dimension_numbers = #tpu.dot_dimension_numbers<[2], [1], [1], [2], [0, 0, 0, 1, 1, 2], [0], [0]>} : vector<4x8x8xbf16>, vector<4x8x32xbf16>, vector<4x8x32xf32> -> vector<4x8x32xf32>
    "tpu.trace_stop"() : () -> ()
    %116 = vector.extract_strided_slice %115 {offsets = [0, 0, 0], sizes = [1, 8, 32], strides = [1, 1, 1]} : vector<4x8x32xf32> to vector<1x8x32xf32>
    %117 = vector.shape_cast %116 : vector<1x8x32xf32> to vector<8x32xf32>
    %118 = vector.extract_strided_slice %115 {offsets = [1, 0, 0], sizes = [1, 8, 32], strides = [1, 1, 1]} : vector<4x8x32xf32> to vector<1x8x32xf32>
    %119 = vector.shape_cast %118 : vector<1x8x32xf32> to vector<8x32xf32>
    %120 = arith.addf %117, %119 : vector<8x32xf32>
    %121 = vector.extract_strided_slice %115 {offsets = [2, 0, 0], sizes = [1, 8, 32], strides = [1, 1, 1]} : vector<4x8x32xf32> to vector<1x8x32xf32>
    %122 = vector.shape_cast %121 : vector<1x8x32xf32> to vector<8x32xf32>
    %123 = arith.addf %120, %122 : vector<8x32xf32>
    %124 = vector.extract_strided_slice %115 {offsets = [3, 0, 0], sizes = [1, 8, 32], strides = [1, 1, 1]} : vector<4x8x32xf32> to vector<1x8x32xf32>
    %125 = vector.shape_cast %124 : vector<1x8x32xf32> to vector<8x32xf32>
    %126 = arith.addf %123, %125 : vector<8x32xf32>
    %127 = vector.broadcast %46 : vector<1x32xf32> to vector<8x32xf32>
    %128 = arith.addf %126, %127 : vector<8x32xf32>
    %129 = arith.addf %78, %128 : vector<8x32xf32>
    %cst_76 = arith.constant dense<0.000000e+00> : vector<8xf32>
    %130 = vector.multi_reduction <add>, %129, %cst_76 [1] : vector<8x32xf32> to vector<8xf32>
    %131 = vector.shape_cast %130 : vector<8xf32> to vector<8x1xf32>
    %cst_77 = arith.constant 3.200000e+01 : f32
    %132 = vector.broadcast %cst_77 : f32 to vector<8x1xf32>
    %133 = arith.divf %131, %132 : vector<8x1xf32>
    %134 = vector.broadcast %133 : vector<8x1xf32> to vector<8x32xf32>
    %135 = arith.subf %129, %134 : vector<8x32xf32>
    %136 = arith.mulf %135, %135 : vector<8x32xf32>
    %cst_78 = arith.constant dense<0.000000e+00> : vector<8xf32>
    %137 = vector.multi_reduction <add>, %136, %cst_78 [1] : vector<8x32xf32> to vector<8xf32>
    %138 = vector.shape_cast %137 : vector<8xf32> to vector<8x1xf32>
    %cst_79 = arith.constant 3.200000e+01 : f32
    %139 = vector.broadcast %cst_79 : f32 to vector<8x1xf32>
    %140 = arith.divf %138, %139 : vector<8x1xf32>
    %cst_80 = arith.constant 9.99999993E-9 : f32
    %141 = vector.broadcast %cst_80 : f32 to vector<8x1xf32>
    %142 = arith.addf %140, %141 : vector<8x1xf32>
    %143 = math.rsqrt %142 : vector<8x1xf32>
    %144 = vector.broadcast %143 : vector<8x1xf32> to vector<8x32xf32>
    %145 = arith.mulf %135, %144 : vector<8x32xf32>
    %146 = vector.broadcast %48 : vector<1x32xf32> to vector<8x32xf32>
    %147 = arith.mulf %145, %146 : vector<8x32xf32>
    %148 = vector.broadcast %50 : vector<1x32xf32> to vector<8x32xf32>
    %149 = arith.addf %147, %148 : vector<8x32xf32>
    %150 = arith.truncf %149 : vector<8x32xf32> to vector<8x32xbf16>
    %cst_81 = arith.constant dense<0.000000e+00> : vector<8x32xf32>
    %151 = tpu.matmul %150, %52, %cst_81 {dimension_numbers = #tpu.dot_dimension_numbers<[1], [0], [0], [1], [0, 0, 1, 1], [], []>} : vector<8x32xbf16>, vector<32x32xbf16>, vector<8x32xf32> -> vector<8x32xf32>
    %152 = vector.broadcast %54 : vector<1x32xf32> to vector<8x32xf32>
    %153 = arith.addf %151, %152 : vector<8x32xf32>
    %cst_82 = arith.constant 5.000000e-01 : f32
    %154 = vector.broadcast %cst_82 : f32 to vector<8x32xf32>
    %155 = arith.mulf %154, %153 : vector<8x32xf32>
    %156 = arith.mulf %153, %153 : vector<8x32xf32>
    %157 = arith.mulf %156, %153 : vector<8x32xf32>
    %cst_83 = arith.constant 4.471500e-02 : f32
    %158 = vector.broadcast %cst_83 : f32 to vector<8x32xf32>
    %159 = arith.mulf %158, %157 : vector<8x32xf32>
    %160 = arith.addf %153, %159 : vector<8x32xf32>
    %cst_84 = arith.constant 0.797884583 : f32
    %161 = vector.broadcast %cst_84 : f32 to vector<8x32xf32>
    %162 = arith.mulf %161, %160 : vector<8x32xf32>
    %163 = math.tanh %162 : vector<8x32xf32>
    %cst_85 = arith.constant 1.000000e+00 : f32
    %164 = vector.broadcast %cst_85 : f32 to vector<8x32xf32>
    %165 = arith.addf %164, %163 : vector<8x32xf32>
    %166 = arith.mulf %155, %165 : vector<8x32xf32>
    %167 = arith.truncf %166 : vector<8x32xf32> to vector<8x32xbf16>
    %cst_86 = arith.constant dense<0.000000e+00> : vector<8x32xf32>
    %168 = tpu.matmul %167, %56, %cst_86 {dimension_numbers = #tpu.dot_dimension_numbers<[1], [0], [0], [1], [0, 0, 1, 1], [], []>} : vector<8x32xbf16>, vector<32x32xbf16>, vector<8x32xf32> -> vector<8x32xf32>
    %169 = vector.broadcast %58 : vector<1x32xf32> to vector<8x32xf32>
    %170 = arith.addf %168, %169 : vector<8x32xf32>
    %171 = arith.addf %170, %149 : vector<8x32xf32>
    %172 = vector.broadcast %30 : vector<8x1xf32> to vector<8x32xf32>
    %173 = arith.mulf %171, %172 : vector<8x32xf32>
    %c0_87 = arith.constant 0 : index
    %c0_88 = arith.constant 0 : index
    %174 = vector.load %arg22[%c0_87, %c0_88] : memref<8x32xf32, #tpu.memory_space<vmem>>, vector<8x32xf32>
    tpu.vector_store %arg22[%c0_87, %c0_88], %173 {strides = array<i32>} : memref<8x32xf32, #tpu.memory_space<vmem>>, vector<8x32xf32>,
    %c1_i32 = arith.constant 1 : i32
    %175 = arith.cmpi eq, %arg1, %c1_i32 : i32
    %176 = arith.extui %175 : i1 to i32
    %c0_i32_89 = arith.constant 0 : i32
    %177 = arith.cmpi ne, %176, %c0_i32_89 : i32
    scf.if %177 {
      %c0_90 = arith.constant 0 : index
      %c0_91 = arith.constant 0 : index
      %c0_92 = arith.constant 0 : index
      %178 = vector.load %arg21[%c0_90, %c0_91, %c0_92] : memref<1x8x32xf32, #tpu.memory_space<vmem>>, vector<1x8x32xf32>
      %179 = vector.shape_cast %178 : vector<1x8x32xf32> to vector<8x32xf32>
      %180 = vector.shape_cast %173 : vector<8x32xf32> to vector<1x8x32xf32>
      tpu.vector_store %arg21[%c0_90, %c0_91, %c0_92], %180 {strides = array<i32>} : memref<1x8x32xf32, #tpu.memory_space<vmem>>, vector<1x8x32xf32>,
    } else {
    }
    return
  }
  func.func @transform_0(%arg0: i32, %arg1: i32) -> (i32, i32, i32) {
    %c0_i32 = arith.constant 0 : i32
    %c0_i32_0 = arith.constant 0 : i32
    %c0_i32_1 = arith.constant 0 : i32
    return %arg0, %c0_i32, %c0_i32_0 : i32, i32, i32
  }
  func.func @transform_1(%arg0: i32, %arg1: i32) -> (i32, i32) {
    %c0_i32 = arith.constant 0 : i32
    %c0_i32_0 = arith.constant 0 : i32
    %c0_i32_1 = arith.constant 0 : i32
    return %c0_i32, %c0_i32_0 : i32, i32
  }
  func.func @transform_2(%arg0: i32, %arg1: i32) -> (i32, i32, i32) {
    %c0_i32 = arith.constant 0 : i32
    %c0_i32_0 = arith.constant 0 : i32
    %c0_i32_1 = arith.constant 0 : i32
    return %arg0, %c0_i32, %c0_i32_0 : i32, i32, i32
  }
  func.func @transform_3(%arg0: i32, %arg1: i32) -> (i32, i32, i32) {
    %c0_i32 = arith.constant 0 : i32
    %c0_i32_0 = arith.constant 0 : i32
    %c0_i32_1 = arith.constant 0 : i32
    return %arg1, %c0_i32, %c0_i32_0 : i32, i32, i32
  }
  func.func @transform_4(%arg0: i32, %arg1: i32) -> (i32, i32, i32) {
    %c0_i32 = arith.constant 0 : i32
    %c0_i32_0 = arith.constant 0 : i32
    %c0_i32_1 = arith.constant 0 : i32
    return %arg1, %c0_i32, %c0_i32_0 : i32, i32, i32
  }
  func.func @transform_5(%arg0: i32, %arg1: i32) -> (i32, i32, i32) {
    %c0_i32 = arith.constant 0 : i32
    %c0_i32_0 = arith.constant 0 : i32
    %c0_i32_1 = arith.constant 0 : i32
    return %arg1, %c0_i32, %c0_i32_0 : i32, i32, i32
  }
  func.func @transform_6(%arg0: i32, %arg1: i32) -> (i32, i32, i32) {
    %c0_i32 = arith.constant 0 : i32
    %c0_i32_0 = arith.constant 0 : i32
    %c0_i32_1 = arith.constant 0 : i32
    return %arg1, %c0_i32, %c0_i32_0 : i32, i32, i32
  }
  func.func @transform_7(%arg0: i32, %arg1: i32) -> (i32, i32, i32, i32) {
    %c0_i32 = arith.constant 0 : i32
    %c0_i32_0 = arith.constant 0 : i32
    %c0_i32_1 = arith.constant 0 : i32
    %c0_i32_2 = arith.constant 0 : i32
    return %arg1, %c0_i32, %c0_i32_0, %c0_i32_1 : i32, i32, i32, i32
  }
  func.func @transform_8(%arg0: i32, %arg1: i32) -> (i32, i32, i32, i32) {
    %c0_i32 = arith.constant 0 : i32
    %c0_i32_0 = arith.constant 0 : i32
    %c0_i32_1 = arith.constant 0 : i32
    %c0_i32_2 = arith.constant 0 : i32
    return %arg1, %c0_i32, %c0_i32_0, %c0_i32_1 : i32, i32, i32, i32
  }
  func.func @transform_9(%arg0: i32, %arg1: i32) -> (i32, i32, i32, i32) {
    %c0_i32 = arith.constant 0 : i32
    %c0_i32_0 = arith.constant 0 : i32
    %c0_i32_1 = arith.constant 0 : i32
    %c0_i32_2 = arith.constant 0 : i32
    return %arg1, %c0_i32, %c0_i32_0, %c0_i32_1 : i32, i32, i32, i32
  }
  func.func @transform_10(%arg0: i32, %arg1: i32) -> (i32, i32, i32, i32) {
    %c0_i32 = arith.constant 0 : i32
    %c0_i32_0 = arith.constant 0 : i32
    %c0_i32_1 = arith.constant 0 : i32
    %c0_i32_2 = arith.constant 0 : i32
    return %arg1, %c0_i32, %c0_i32_0, %c0_i32_1 : i32, i32, i32, i32
  }
  func.func @transform_11(%arg0: i32, %arg1: i32) -> (i32, i32, i32, i32) {
    %c0_i32 = arith.constant 0 : i32
    %c0_i32_0 = arith.constant 0 : i32
    %c0_i32_1 = arith.constant 0 : i32
    %c0_i32_2 = arith.constant 0 : i32
    return %arg1, %c0_i32, %c0_i32_0, %c0_i32_1 : i32, i32, i32, i32
  }
  func.func @transform_12(%arg0: i32, %arg1: i32) -> (i32, i32, i32) {
    %c0_i32 = arith.constant 0 : i32
    %c0_i32_0 = arith.constant 0 : i32
    %c0_i32_1 = arith.constant 0 : i32
    return %arg1, %c0_i32, %c0_i32_0 : i32, i32, i32
  }
  func.func @transform_13(%arg0: i32, %arg1: i32) -> (i32, i32, i32) {
    %c0_i32 = arith.constant 0 : i32
    %c0_i32_0 = arith.constant 0 : i32
    %c0_i32_1 = arith.constant 0 : i32
    return %arg1, %c0_i32, %c0_i32_0 : i32, i32, i32
  }
  func.func @transform_14(%arg0: i32, %arg1: i32) -> (i32, i32, i32) {
    %c0_i32 = arith.constant 0 : i32
    %c0_i32_0 = arith.constant 0 : i32
    %c0_i32_1 = arith.constant 0 : i32
    return %arg1, %c0_i32, %c0_i32_0 : i32, i32, i32
  }
  func.func @transform_15(%arg0: i32, %arg1: i32) -> (i32, i32, i32) {
    %c0_i32 = arith.constant 0 : i32
    %c0_i32_0 = arith.constant 0 : i32
    %c0_i32_1 = arith.constant 0 : i32
    return %arg1, %c0_i32, %c0_i32_0 : i32, i32, i32
  }
  func.func @transform_16(%arg0: i32, %arg1: i32) -> (i32, i32, i32) {
    %c0_i32 = arith.constant 0 : i32
    %c0_i32_0 = arith.constant 0 : i32
    %c0_i32_1 = arith.constant 0 : i32
    return %arg1, %c0_i32, %c0_i32_0 : i32, i32, i32
  }
  func.func @transform_17(%arg0: i32, %arg1: i32) -> (i32, i32, i32) {
    %c0_i32 = arith.constant 0 : i32
    %c0_i32_0 = arith.constant 0 : i32
    %c0_i32_1 = arith.constant 0 : i32
    return %arg1, %c0_i32, %c0_i32_0 : i32, i32, i32
  }
  func.func @transform_18(%arg0: i32, %arg1: i32) -> (i32, i32, i32) {
    %c0_i32 = arith.constant 0 : i32
    %c0_i32_0 = arith.constant 0 : i32
    %c0_i32_1 = arith.constant 0 : i32
    return %arg1, %c0_i32, %c0_i32_0 : i32, i32, i32
  }
  func.func @transform_19(%arg0: i32, %arg1: i32) -> (i32, i32, i32) {
    %c0_i32 = arith.constant 0 : i32
    %c0_i32_0 = arith.constant 0 : i32
    %c0_i32_1 = arith.constant 0 : i32
    return %arg0, %c0_i32, %c0_i32_0 : i32, i32, i32
  }
}

module attributes {stable_mosaic.version = 11 : i64} {
  func.func @_cross_stack_kernel(%arg0: i32, %arg1: i32, %arg2: memref<1x8x32xf32, #tpu.memory_space<vmem>>, %arg3: memref<1x8x32xf32, #tpu.memory_space<vmem>>, %arg4: memref<8x8xf32, #tpu.memory_space<vmem>>, %arg5: memref<1x8x1xf32, #tpu.memory_space<vmem>>, %arg6: memref<1x32xf32, #tpu.memory_space<vmem>>, %arg7: memref<1x32xf32, #tpu.memory_space<vmem>>, %arg8: memref<1x1x32xf32, #tpu.memory_space<vmem>>, %arg9: memref<1x1x32xf32, #tpu.memory_space<vmem>>, %arg10: memref<1x2x32x16xbf16, #tpu.memory_space<vmem>>, %arg11: memref<1x2x1x16xf32, #tpu.memory_space<vmem>>, %arg12: memref<1x4x32x16xbf16, #tpu.memory_space<vmem>>, %arg13: memref<1x4x1x16xf32, #tpu.memory_space<vmem>>, %arg14: memref<1x2x16x32xbf16, #tpu.memory_space<vmem>>, %arg15: memref<1x1x32xf32, #tpu.memory_space<vmem>>, %arg16: memref<1x1x32xf32, #tpu.memory_space<vmem>>, %arg17: memref<1x1x32xf32, #tpu.memory_space<vmem>>, %arg18: memref<1x32x32xbf16, #tpu.memory_space<vmem>>, %arg19: memref<1x1x32xf32, #tpu.memory_space<vmem>>, %arg20: memref<1x32x32xbf16, #tpu.memory_space<vmem>>, %arg21: memref<1x1x32xf32, #tpu.memory_space<vmem>>, %arg22: memref<1x8x32xf32, #tpu.memory_space<vmem>>, %arg23: memref<8x32xf32, #tpu.memory_space<vmem>>, %arg24: memref<8x32xf32, #tpu.memory_space<vmem>>) attributes {dimension_semantics = [#tpu.dimension_semantics<parallel>, #tpu.dimension_semantics<arbitrary>], iteration_bounds = array<i64: 2, 1>, scalar_prefetch = 0 : i64, scratch_operands = 2 : i64, tpu.core_type = #tpu.core_type<tc>, window_params = [{transform_indices = @transform_0, window_bounds = array<i64: 1, 8, 32>}, {transform_indices = @transform_1, window_bounds = array<i64: 1, 8, 32>}, {pipeline_mode = #tpu.pipeline_mode<synchronous>, transform_indices = @transform_2, window_bounds = array<i64: 8, 8>}, {transform_indices = @transform_3, window_bounds = array<i64: 1, 8, 1>}, {pipeline_mode = #tpu.pipeline_mode<synchronous>, transform_indices = @transform_4, window_bounds = array<i64: 1, 32>}, {pipeline_mode = #tpu.pipeline_mode<synchronous>, transform_indices = @transform_5, window_bounds = array<i64: 1, 32>}, {transform_indices = @transform_6, window_bounds = array<i64: 1, 1, 32>}, {transform_indices = @transform_7, window_bounds = array<i64: 1, 1, 32>}, {transform_indices = @transform_8, window_bounds = array<i64: 1, 2, 32, 16>}, {transform_indices = @transform_9, window_bounds = array<i64: 1, 2, 1, 16>}, {transform_indices = @transform_10, window_bounds = array<i64: 1, 4, 32, 16>}, {transform_indices = @transform_11, window_bounds = array<i64: 1, 4, 1, 16>}, {transform_indices = @transform_12, window_bounds = array<i64: 1, 2, 16, 32>}, {transform_indices = @transform_13, window_bounds = array<i64: 1, 1, 32>}, {transform_indices = @transform_14, window_bounds = array<i64: 1, 1, 32>}, {transform_indices = @transform_15, window_bounds = array<i64: 1, 1, 32>}, {transform_indices = @transform_16, window_bounds = array<i64: 1, 32, 32>}, {transform_indices = @transform_17, window_bounds = array<i64: 1, 1, 32>}, {transform_indices = @transform_18, window_bounds = array<i64: 1, 32, 32>}, {transform_indices = @transform_19, window_bounds = array<i64: 1, 1, 32>}, {transform_indices = @transform_20, window_bounds = array<i64: 1, 8, 32>}]} {
    %c0_i32 = arith.constant 0 : i32
    %0 = arith.cmpi eq, %arg1, %c0_i32 : i32
    %1 = arith.extui %0 : i1 to i32
    %c0_i32_0 = arith.constant 0 : i32
    %2 = arith.cmpi ne, %1, %c0_i32_0 : i32
    scf.if %2 {
      %c0_82 = arith.constant 0 : index
      %c0_83 = arith.constant 0 : index
      %c0_84 = arith.constant 0 : index
      %149 = vector.load %arg2[%c0_82, %c0_83, %c0_84] : memref<1x8x32xf32, #tpu.memory_space<vmem>>, vector<1x8x32xf32>
      %150 = vector.shape_cast %149 : vector<1x8x32xf32> to vector<8x32xf32>
      %c0_85 = arith.constant 0 : index
      %c0_86 = arith.constant 0 : index
      %151 = vector.load %arg23[%c0_85, %c0_86] : memref<8x32xf32, #tpu.memory_space<vmem>>, vector<8x32xf32>
      tpu.vector_store %arg23[%c0_85, %c0_86], %150 {strides = array<i32>} : memref<8x32xf32, #tpu.memory_space<vmem>>, vector<8x32xf32>,
      %c0_87 = arith.constant 0 : index
      %c0_88 = arith.constant 0 : index
      %c0_89 = arith.constant 0 : index
      %152 = vector.load %arg3[%c0_87, %c0_88, %c0_89] : memref<1x8x32xf32, #tpu.memory_space<vmem>>, vector<1x8x32xf32>
      %153 = vector.shape_cast %152 : vector<1x8x32xf32> to vector<8x32xf32>
      %c0_90 = arith.constant 0 : index
      %c0_91 = arith.constant 0 : index
      %154 = vector.load %arg6[%c0_90, %c0_91] : memref<1x32xf32, #tpu.memory_space<vmem>>, vector<1x32xf32>
      %c0_92 = arith.constant 0 : index
      %c0_93 = arith.constant 0 : index
      %155 = vector.load %arg7[%c0_92, %c0_93] : memref<1x32xf32, #tpu.memory_space<vmem>>, vector<1x32xf32>
      %cst_94 = arith.constant dense<0.000000e+00> : vector<8xf32>
      %156 = vector.multi_reduction <add>, %153, %cst_94 [1] : vector<8x32xf32> to vector<8xf32>
      %157 = vector.shape_cast %156 : vector<8xf32> to vector<8x1xf32>
      %cst_95 = arith.constant 3.200000e+01 : f32
      %158 = vector.broadcast %cst_95 : f32 to vector<8x1xf32>
      %159 = arith.divf %157, %158 : vector<8x1xf32>
      %160 = vector.broadcast %159 : vector<8x1xf32> to vector<8x32xf32>
      %161 = arith.subf %153, %160 : vector<8x32xf32>
      %162 = arith.mulf %161, %161 : vector<8x32xf32>
      %cst_96 = arith.constant dense<0.000000e+00> : vector<8xf32>
      %163 = vector.multi_reduction <add>, %162, %cst_96 [1] : vector<8x32xf32> to vector<8xf32>
      %164 = vector.shape_cast %163 : vector<8xf32> to vector<8x1xf32>
      %cst_97 = arith.constant 3.200000e+01 : f32
      %165 = vector.broadcast %cst_97 : f32 to vector<8x1xf32>
      %166 = arith.divf %164, %165 : vector<8x1xf32>
      %cst_98 = arith.constant 9.99999993E-9 : f32
      %167 = vector.broadcast %cst_98 : f32 to vector<8x1xf32>
      %168 = arith.addf %166, %167 : vector<8x1xf32>
      %169 = math.rsqrt %168 : vector<8x1xf32>
      %170 = vector.broadcast %169 : vector<8x1xf32> to vector<8x32xf32>
      %171 = arith.mulf %161, %170 : vector<8x32xf32>
      %172 = vector.broadcast %154 : vector<1x32xf32> to vector<8x32xf32>
      %173 = arith.mulf %171, %172 : vector<8x32xf32>
      %174 = vector.broadcast %155 : vector<1x32xf32> to vector<8x32xf32>
      %175 = arith.addf %173, %174 : vector<8x32xf32>
      %c0_99 = arith.constant 0 : index
      %c0_100 = arith.constant 0 : index
      %176 = vector.load %arg24[%c0_99, %c0_100] : memref<8x32xf32, #tpu.memory_space<vmem>>, vector<8x32xf32>
      tpu.vector_store %arg24[%c0_99, %c0_100], %175 {strides = array<i32>} : memref<8x32xf32, #tpu.memory_space<vmem>>, vector<8x32xf32>,
    } else {
    }
    %c0 = arith.constant 0 : index
    %c0_1 = arith.constant 0 : index
    %3 = vector.load %arg23[%c0, %c0_1] : memref<8x32xf32, #tpu.memory_space<vmem>>, vector<8x32xf32>
    %c0_2 = arith.constant 0 : index
    %c0_3 = arith.constant 0 : index
    %4 = vector.load %arg24[%c0_2, %c0_3] : memref<8x32xf32, #tpu.memory_space<vmem>>, vector<8x32xf32>
    %c0_4 = arith.constant 0 : index
    %c0_5 = arith.constant 0 : index
    %5 = vector.load %arg4[%c0_4, %c0_5] : memref<8x8xf32, #tpu.memory_space<vmem>>, vector<8x8xf32>
    %c0_6 = arith.constant 0 : index
    %c0_7 = arith.constant 0 : index
    %c0_8 = arith.constant 0 : index
    %6 = vector.load %arg5[%c0_6, %c0_7, %c0_8] : memref<1x8x1xf32, #tpu.memory_space<vmem>>, vector<1x8x1xf32>
    %7 = vector.shape_cast %6 : vector<1x8x1xf32> to vector<8x1xf32>
    %c0_9 = arith.constant 0 : index
    %c0_10 = arith.constant 0 : index
    %c0_11 = arith.constant 0 : index
    %8 = vector.load %arg8[%c0_9, %c0_10, %c0_11] : memref<1x1x32xf32, #tpu.memory_space<vmem>>, vector<1x1x32xf32>
    %9 = vector.shape_cast %8 : vector<1x1x32xf32> to vector<1x32xf32>
    %c0_12 = arith.constant 0 : index
    %c0_13 = arith.constant 0 : index
    %c0_14 = arith.constant 0 : index
    %10 = vector.load %arg9[%c0_12, %c0_13, %c0_14] : memref<1x1x32xf32, #tpu.memory_space<vmem>>, vector<1x1x32xf32>
    %11 = vector.shape_cast %10 : vector<1x1x32xf32> to vector<1x32xf32>
    %c0_15 = arith.constant 0 : index
    %c0_16 = arith.constant 0 : index
    %c0_17 = arith.constant 0 : index
    %c0_18 = arith.constant 0 : index
    %12 = vector.load %arg10[%c0_15, %c0_16, %c0_17, %c0_18] : memref<1x2x32x16xbf16, #tpu.memory_space<vmem>>, vector<1x2x32x16xbf16>
    %13 = vector.shape_cast %12 : vector<1x2x32x16xbf16> to vector<2x32x16xbf16>
    %c0_19 = arith.constant 0 : index
    %c0_20 = arith.constant 0 : index
    %c0_21 = arith.constant 0 : index
    %c0_22 = arith.constant 0 : index
    %14 = vector.load %arg11[%c0_19, %c0_20, %c0_21, %c0_22] : memref<1x2x1x16xf32, #tpu.memory_space<vmem>>, vector<1x2x1x16xf32>
    %15 = vector.shape_cast %14 : vector<1x2x1x16xf32> to vector<2x1x16xf32>
    %c0_23 = arith.constant 0 : index
    %c0_24 = arith.constant 0 : index
    %c0_25 = arith.constant 0 : index
    %c0_26 = arith.constant 0 : index
    %16 = vector.load %arg12[%c0_23, %c0_24, %c0_25, %c0_26] : memref<1x4x32x16xbf16, #tpu.memory_space<vmem>>, vector<1x4x32x16xbf16>
    %17 = vector.shape_cast %16 : vector<1x4x32x16xbf16> to vector<4x32x16xbf16>
    %c0_27 = arith.constant 0 : index
    %c0_28 = arith.constant 0 : index
    %c0_29 = arith.constant 0 : index
    %c0_30 = arith.constant 0 : index
    %18 = vector.load %arg13[%c0_27, %c0_28, %c0_29, %c0_30] : memref<1x4x1x16xf32, #tpu.memory_space<vmem>>, vector<1x4x1x16xf32>
    %19 = vector.shape_cast %18 : vector<1x4x1x16xf32> to vector<4x1x16xf32>
    %c0_31 = arith.constant 0 : index
    %c0_32 = arith.constant 0 : index
    %c0_33 = arith.constant 0 : index
    %c0_34 = arith.constant 0 : index
    %20 = vector.load %arg14[%c0_31, %c0_32, %c0_33, %c0_34] : memref<1x2x16x32xbf16, #tpu.memory_space<vmem>>, vector<1x2x16x32xbf16>
    %21 = vector.shape_cast %20 : vector<1x2x16x32xbf16> to vector<2x16x32xbf16>
    %c0_35 = arith.constant 0 : index
    %c0_36 = arith.constant 0 : index
    %c0_37 = arith.constant 0 : index
    %22 = vector.load %arg15[%c0_35, %c0_36, %c0_37] : memref<1x1x32xf32, #tpu.memory_space<vmem>>, vector<1x1x32xf32>
    %23 = vector.shape_cast %22 : vector<1x1x32xf32> to vector<1x32xf32>
    %c0_38 = arith.constant 0 : index
    %c0_39 = arith.constant 0 : index
    %c0_40 = arith.constant 0 : index
    %24 = vector.load %arg16[%c0_38, %c0_39, %c0_40] : memref<1x1x32xf32, #tpu.memory_space<vmem>>, vector<1x1x32xf32>
    %25 = vector.shape_cast %24 : vector<1x1x32xf32> to vector<1x32xf32>
    %c0_41 = arith.constant 0 : index
    %c0_42 = arith.constant 0 : index
    %c0_43 = arith.constant 0 : index
    %26 = vector.load %arg17[%c0_41, %c0_42, %c0_43] : memref<1x1x32xf32, #tpu.memory_space<vmem>>, vector<1x1x32xf32>
    %27 = vector.shape_cast %26 : vector<1x1x32xf32> to vector<1x32xf32>
    %c0_44 = arith.constant 0 : index
    %c0_45 = arith.constant 0 : index
    %c0_46 = arith.constant 0 : index
    %28 = vector.load %arg18[%c0_44, %c0_45, %c0_46] : memref<1x32x32xbf16, #tpu.memory_space<vmem>>, vector<1x32x32xbf16>
    %29 = vector.shape_cast %28 : vector<1x32x32xbf16> to vector<32x32xbf16>
    %c0_47 = arith.constant 0 : index
    %c0_48 = arith.constant 0 : index
    %c0_49 = arith.constant 0 : index
    %30 = vector.load %arg19[%c0_47, %c0_48, %c0_49] : memref<1x1x32xf32, #tpu.memory_space<vmem>>, vector<1x1x32xf32>
    %31 = vector.shape_cast %30 : vector<1x1x32xf32> to vector<1x32xf32>
    %c0_50 = arith.constant 0 : index
    %c0_51 = arith.constant 0 : index
    %c0_52 = arith.constant 0 : index
    %32 = vector.load %arg20[%c0_50, %c0_51, %c0_52] : memref<1x32x32xbf16, #tpu.memory_space<vmem>>, vector<1x32x32xbf16>
    %33 = vector.shape_cast %32 : vector<1x32x32xbf16> to vector<32x32xbf16>
    %c0_53 = arith.constant 0 : index
    %c0_54 = arith.constant 0 : index
    %c0_55 = arith.constant 0 : index
    %34 = vector.load %arg21[%c0_53, %c0_54, %c0_55] : memref<1x1x32xf32, #tpu.memory_space<vmem>>, vector<1x1x32xf32>
    %35 = vector.shape_cast %34 : vector<1x1x32xf32> to vector<1x32xf32>
    %cst = arith.constant dense<0.000000e+00> : vector<8xf32>
    %36 = vector.multi_reduction <add>, %3, %cst [1] : vector<8x32xf32> to vector<8xf32>
    %37 = vector.shape_cast %36 : vector<8xf32> to vector<8x1xf32>
    %cst_56 = arith.constant 3.200000e+01 : f32
    %38 = vector.broadcast %cst_56 : f32 to vector<8x1xf32>
    %39 = arith.divf %37, %38 : vector<8x1xf32>
    %40 = vector.broadcast %39 : vector<8x1xf32> to vector<8x32xf32>
    %41 = arith.subf %3, %40 : vector<8x32xf32>
    %42 = arith.mulf %41, %41 : vector<8x32xf32>
    %cst_57 = arith.constant dense<0.000000e+00> : vector<8xf32>
    %43 = vector.multi_reduction <add>, %42, %cst_57 [1] : vector<8x32xf32> to vector<8xf32>
    %44 = vector.shape_cast %43 : vector<8xf32> to vector<8x1xf32>
    %cst_58 = arith.constant 3.200000e+01 : f32
    %45 = vector.broadcast %cst_58 : f32 to vector<8x1xf32>
    %46 = arith.divf %44, %45 : vector<8x1xf32>
    %cst_59 = arith.constant 9.99999993E-9 : f32
    %47 = vector.broadcast %cst_59 : f32 to vector<8x1xf32>
    %48 = arith.addf %46, %47 : vector<8x1xf32>
    %49 = math.rsqrt %48 : vector<8x1xf32>
    %50 = vector.broadcast %49 : vector<8x1xf32> to vector<8x32xf32>
    %51 = arith.mulf %41, %50 : vector<8x32xf32>
    %52 = vector.broadcast %9 : vector<1x32xf32> to vector<8x32xf32>
    %53 = arith.mulf %51, %52 : vector<8x32xf32>
    %54 = vector.broadcast %11 : vector<1x32xf32> to vector<8x32xf32>
    %55 = arith.addf %53, %54 : vector<8x32xf32>
    %56 = arith.truncf %55 : vector<8x32xf32> to vector<8x32xbf16>
    %57 = vector.shape_cast %56 : vector<8x32xbf16> to vector<1x8x32xbf16>
    %58 = vector.shape_cast %57 : vector<1x8x32xbf16> to vector<1x8x32xbf16>
    %59 = vector.broadcast %58 : vector<1x8x32xbf16> to vector<2x8x32xbf16>
    %60 = arith.truncf %4 : vector<8x32xf32> to vector<8x32xbf16>
    %61 = vector.shape_cast %60 : vector<8x32xbf16> to vector<1x8x32xbf16>
    %62 = vector.shape_cast %61 : vector<1x8x32xbf16> to vector<1x8x32xbf16>
    %63 = vector.broadcast %62 : vector<1x8x32xbf16> to vector<4x8x32xbf16>
    "tpu.trace_start"() <{level = 10 : i32, message = "hsk,hkd->hsd"}> : () -> ()
    %cst_60 = arith.constant dense<0.000000e+00> : vector<2x8x16xf32>
    %64 = tpu.matmul %59, %13, %cst_60 {dimension_numbers = #tpu.dot_dimension_numbers<[2], [1], [1], [2], [0, 0, 0, 1, 1, 2], [0], [0]>} : vector<2x8x32xbf16>, vector<2x32x16xbf16>, vector<2x8x16xf32> -> vector<2x8x16xf32>
    "tpu.trace_stop"() : () -> ()
    %65 = vector.broadcast %15 : vector<2x1x16xf32> to vector<2x8x16xf32>
    %66 = arith.addf %64, %65 : vector<2x8x16xf32>
    "tpu.trace_start"() <{level = 10 : i32, message = "hsk,hkd->hsd"}> : () -> ()
    %cst_61 = arith.constant dense<0.000000e+00> : vector<4x8x16xf32>
    %67 = tpu.matmul %63, %17, %cst_61 {dimension_numbers = #tpu.dot_dimension_numbers<[2], [1], [1], [2], [0, 0, 0, 1, 1, 2], [0], [0]>} : vector<4x8x32xbf16>, vector<4x32x16xbf16>, vector<4x8x16xf32> -> vector<4x8x16xf32>
    "tpu.trace_stop"() : () -> ()
    %68 = vector.broadcast %19 : vector<4x1x16xf32> to vector<4x8x16xf32>
    %69 = arith.addf %67, %68 : vector<4x8x16xf32>
    %70 = vector.extract_strided_slice %69 {offsets = [0, 0, 0], sizes = [2, 8, 16], strides = [1, 1, 1]} : vector<4x8x16xf32> to vector<2x8x16xf32>
    %71 = vector.extract_strided_slice %69 {offsets = [2, 0, 0], sizes = [2, 8, 16], strides = [1, 1, 1]} : vector<4x8x16xf32> to vector<2x8x16xf32>
    %72 = arith.truncf %66 : vector<2x8x16xf32> to vector<2x8x16xbf16>
    %73 = arith.truncf %70 : vector<2x8x16xf32> to vector<2x8x16xbf16>
    "tpu.trace_start"() <{level = 10 : i32, message = "hqd,hkd->hqk"}> : () -> ()
    %cst_62 = arith.constant dense<0.000000e+00> : vector<2x8x8xf32>
    %74 = tpu.matmul %72, %73, %cst_62 {dimension_numbers = #tpu.dot_dimension_numbers<[2], [2], [1], [1], [0, 0, 0, 1, 1, 1], [0], [0]>} : vector<2x8x16xbf16>, vector<2x8x16xbf16>, vector<2x8x8xf32> -> vector<2x8x8xf32>
    "tpu.trace_stop"() : () -> ()
    %75 = vector.shape_cast %5 : vector<8x8xf32> to vector<1x8x8xf32>
    %76 = vector.broadcast %75 : vector<1x8x8xf32> to vector<2x8x8xf32>
    %77 = arith.addf %74, %76 : vector<2x8x8xf32>
    %cst_63 = arith.constant dense<0xFF800000> : vector<2x8xf32>
    %78 = vector.multi_reduction <maximumf>, %77, %cst_63 [2] : vector<2x8x8xf32> to vector<2x8xf32>
    %79 = vector.shape_cast %78 : vector<2x8xf32> to vector<2x8x1xf32>
    %80 = vector.broadcast %79 : vector<2x8x1xf32> to vector<2x8x8xf32>
    %81 = arith.subf %77, %80 : vector<2x8x8xf32>
    %82 = math.exp %81 : vector<2x8x8xf32>
    %cst_64 = arith.constant dense<0.000000e+00> : vector<2x8xf32>
    %83 = vector.multi_reduction <add>, %82, %cst_64 [2] : vector<2x8x8xf32> to vector<2x8xf32>
    %84 = vector.shape_cast %83 : vector<2x8xf32> to vector<2x8x1xf32>
    %85 = tpu.reciprocal %84 {approx = true} : vector<2x8x1xf32> -> vector<2x8x1xf32>
    %86 = vector.broadcast %85 : vector<2x8x1xf32> to vector<2x8x8xf32>
    %87 = arith.mulf %82, %86 : vector<2x8x8xf32>
    %88 = arith.truncf %87 : vector<2x8x8xf32> to vector<2x8x8xbf16>
    %89 = arith.truncf %71 : vector<2x8x16xf32> to vector<2x8x16xbf16>
    "tpu.trace_start"() <{level = 10 : i32, message = "hqk,hkd->hqd"}> : () -> ()
    %cst_65 = arith.constant dense<0.000000e+00> : vector<2x8x16xf32>
    %90 = tpu.matmul %88, %89, %cst_65 {dimension_numbers = #tpu.dot_dimension_numbers<[2], [1], [1], [2], [0, 0, 0, 1, 1, 2], [0], [0]>} : vector<2x8x8xbf16>, vector<2x8x16xbf16>, vector<2x8x16xf32> -> vector<2x8x16xf32>
    "tpu.trace_stop"() : () -> ()
    %91 = arith.truncf %90 : vector<2x8x16xf32> to vector<2x8x16xbf16>
    "tpu.trace_start"() <{level = 10 : i32, message = "hsd,hdf->hsf"}> : () -> ()
    %cst_66 = arith.constant dense<0.000000e+00> : vector<2x8x32xf32>
    %92 = tpu.matmul %91, %21, %cst_66 {dimension_numbers = #tpu.dot_dimension_numbers<[2], [1], [1], [2], [0, 0, 0, 1, 1, 2], [0], [0]>} : vector<2x8x16xbf16>, vector<2x16x32xbf16>, vector<2x8x32xf32> -> vector<2x8x32xf32>
    "tpu.trace_stop"() : () -> ()
    %93 = vector.extract_strided_slice %92 {offsets = [0, 0, 0], sizes = [1, 8, 32], strides = [1, 1, 1]} : vector<2x8x32xf32> to vector<1x8x32xf32>
    %94 = vector.shape_cast %93 : vector<1x8x32xf32> to vector<8x32xf32>
    %95 = vector.extract_strided_slice %92 {offsets = [1, 0, 0], sizes = [1, 8, 32], strides = [1, 1, 1]} : vector<2x8x32xf32> to vector<1x8x32xf32>
    %96 = vector.shape_cast %95 : vector<1x8x32xf32> to vector<8x32xf32>
    %97 = arith.addf %94, %96 : vector<8x32xf32>
    %98 = vector.broadcast %23 : vector<1x32xf32> to vector<8x32xf32>
    %99 = arith.addf %97, %98 : vector<8x32xf32>
    %100 = arith.addf %55, %99 : vector<8x32xf32>
    %cst_67 = arith.constant dense<0.000000e+00> : vector<8xf32>
    %101 = vector.multi_reduction <add>, %100, %cst_67 [1] : vector<8x32xf32> to vector<8xf32>
    %102 = vector.shape_cast %101 : vector<8xf32> to vector<8x1xf32>
    %cst_68 = arith.constant 3.200000e+01 : f32
    %103 = vector.broadcast %cst_68 : f32 to vector<8x1xf32>
    %104 = arith.divf %102, %103 : vector<8x1xf32>
    %105 = vector.broadcast %104 : vector<8x1xf32> to vector<8x32xf32>
    %106 = arith.subf %100, %105 : vector<8x32xf32>
    %107 = arith.mulf %106, %106 : vector<8x32xf32>
    %cst_69 = arith.constant dense<0.000000e+00> : vector<8xf32>
    %108 = vector.multi_reduction <add>, %107, %cst_69 [1] : vector<8x32xf32> to vector<8xf32>
    %109 = vector.shape_cast %108 : vector<8xf32> to vector<8x1xf32>
    %cst_70 = arith.constant 3.200000e+01 : f32
    %110 = vector.broadcast %cst_70 : f32 to vector<8x1xf32>
    %111 = arith.divf %109, %110 : vector<8x1xf32>
    %cst_71 = arith.constant 9.99999993E-9 : f32
    %112 = vector.broadcast %cst_71 : f32 to vector<8x1xf32>
    %113 = arith.addf %111, %112 : vector<8x1xf32>
    %114 = math.rsqrt %113 : vector<8x1xf32>
    %115 = vector.broadcast %114 : vector<8x1xf32> to vector<8x32xf32>
    %116 = arith.mulf %106, %115 : vector<8x32xf32>
    %117 = vector.broadcast %25 : vector<1x32xf32> to vector<8x32xf32>
    %118 = arith.mulf %116, %117 : vector<8x32xf32>
    %119 = vector.broadcast %27 : vector<1x32xf32> to vector<8x32xf32>
    %120 = arith.addf %118, %119 : vector<8x32xf32>
    %121 = arith.truncf %120 : vector<8x32xf32> to vector<8x32xbf16>
    %cst_72 = arith.constant dense<0.000000e+00> : vector<8x32xf32>
    %122 = tpu.matmul %121, %29, %cst_72 {dimension_numbers = #tpu.dot_dimension_numbers<[1], [0], [0], [1], [0, 0, 1, 1], [], []>} : vector<8x32xbf16>, vector<32x32xbf16>, vector<8x32xf32> -> vector<8x32xf32>
    %123 = vector.broadcast %31 : vector<1x32xf32> to vector<8x32xf32>
    %124 = arith.addf %122, %123 : vector<8x32xf32>
    %cst_73 = arith.constant 5.000000e-01 : f32
    %125 = vector.broadcast %cst_73 : f32 to vector<8x32xf32>
    %126 = arith.mulf %125, %124 : vector<8x32xf32>
    %127 = arith.mulf %124, %124 : vector<8x32xf32>
    %128 = arith.mulf %127, %124 : vector<8x32xf32>
    %cst_74 = arith.constant 4.471500e-02 : f32
    %129 = vector.broadcast %cst_74 : f32 to vector<8x32xf32>
    %130 = arith.mulf %129, %128 : vector<8x32xf32>
    %131 = arith.addf %124, %130 : vector<8x32xf32>
    %cst_75 = arith.constant 0.797884583 : f32
    %132 = vector.broadcast %cst_75 : f32 to vector<8x32xf32>
    %133 = arith.mulf %132, %131 : vector<8x32xf32>
    %134 = math.tanh %133 : vector<8x32xf32>
    %cst_76 = arith.constant 1.000000e+00 : f32
    %135 = vector.broadcast %cst_76 : f32 to vector<8x32xf32>
    %136 = arith.addf %135, %134 : vector<8x32xf32>
    %137 = arith.mulf %126, %136 : vector<8x32xf32>
    %138 = arith.truncf %137 : vector<8x32xf32> to vector<8x32xbf16>
    %cst_77 = arith.constant dense<0.000000e+00> : vector<8x32xf32>
    %139 = tpu.matmul %138, %33, %cst_77 {dimension_numbers = #tpu.dot_dimension_numbers<[1], [0], [0], [1], [0, 0, 1, 1], [], []>} : vector<8x32xbf16>, vector<32x32xbf16>, vector<8x32xf32> -> vector<8x32xf32>
    %140 = vector.broadcast %35 : vector<1x32xf32> to vector<8x32xf32>
    %141 = arith.addf %139, %140 : vector<8x32xf32>
    %142 = arith.addf %141, %120 : vector<8x32xf32>
    %143 = vector.broadcast %7 : vector<8x1xf32> to vector<8x32xf32>
    %144 = arith.mulf %142, %143 : vector<8x32xf32>
    %c0_78 = arith.constant 0 : index
    %c0_79 = arith.constant 0 : index
    %145 = vector.load %arg23[%c0_78, %c0_79] : memref<8x32xf32, #tpu.memory_space<vmem>>, vector<8x32xf32>
    tpu.vector_store %arg23[%c0_78, %c0_79], %144 {strides = array<i32>} : memref<8x32xf32, #tpu.memory_space<vmem>>, vector<8x32xf32>,
    %c0_i32_80 = arith.constant 0 : i32
    %146 = arith.cmpi eq, %arg1, %c0_i32_80 : i32
    %147 = arith.extui %146 : i1 to i32
    %c0_i32_81 = arith.constant 0 : i32
    %148 = arith.cmpi ne, %147, %c0_i32_81 : i32
    scf.if %148 {
      %c0_82 = arith.constant 0 : index
      %c0_83 = arith.constant 0 : index
      %c0_84 = arith.constant 0 : index
      %149 = vector.load %arg22[%c0_82, %c0_83, %c0_84] : memref<1x8x32xf32, #tpu.memory_space<vmem>>, vector<1x8x32xf32>
      %150 = vector.shape_cast %149 : vector<1x8x32xf32> to vector<8x32xf32>
      %151 = vector.shape_cast %144 : vector<8x32xf32> to vector<1x8x32xf32>
      tpu.vector_store %arg22[%c0_82, %c0_83, %c0_84], %151 {strides = array<i32>} : memref<1x8x32xf32, #tpu.memory_space<vmem>>, vector<1x8x32xf32>,
    } else {
    }
    return
  }
  func.func @transform_0(%arg0: i32, %arg1: i32) -> (i32, i32, i32) {
    %c0_i32 = arith.constant 0 : i32
    %c0_i32_0 = arith.constant 0 : i32
    %c0_i32_1 = arith.constant 0 : i32
    return %arg0, %c0_i32, %c0_i32_0 : i32, i32, i32
  }
  func.func @transform_1(%arg0: i32, %arg1: i32) -> (i32, i32, i32) {
    %c0_i32 = arith.constant 0 : i32
    %c0_i32_0 = arith.constant 0 : i32
    %c0_i32_1 = arith.constant 0 : i32
    return %arg0, %c0_i32, %c0_i32_0 : i32, i32, i32
  }
  func.func @transform_2(%arg0: i32, %arg1: i32) -> (i32, i32) {
    %c0_i32 = arith.constant 0 : i32
    %c0_i32_0 = arith.constant 0 : i32
    %c0_i32_1 = arith.constant 0 : i32
    return %c0_i32, %c0_i32_0 : i32, i32
  }
  func.func @transform_3(%arg0: i32, %arg1: i32) -> (i32, i32, i32) {
    %c0_i32 = arith.constant 0 : i32
    %c0_i32_0 = arith.constant 0 : i32
    %c0_i32_1 = arith.constant 0 : i32
    return %arg0, %c0_i32, %c0_i32_0 : i32, i32, i32
  }
  func.func @transform_4(%arg0: i32, %arg1: i32) -> (i32, i32) {
    %c0_i32 = arith.constant 0 : i32
    %c0_i32_0 = arith.constant 0 : i32
    %c0_i32_1 = arith.constant 0 : i32
    return %c0_i32, %c0_i32_0 : i32, i32
  }
  func.func @transform_5(%arg0: i32, %arg1: i32) -> (i32, i32) {
    %c0_i32 = arith.constant 0 : i32
    %c0_i32_0 = arith.constant 0 : i32
    %c0_i32_1 = arith.constant 0 : i32
    return %c0_i32, %c0_i32_0 : i32, i32
  }
  func.func @transform_6(%arg0: i32, %arg1: i32) -> (i32, i32, i32) {
    %c0_i32 = arith.constant 0 : i32
    %c0_i32_0 = arith.constant 0 : i32
    %c0_i32_1 = arith.constant 0 : i32
    return %arg1, %c0_i32, %c0_i32_0 : i32, i32, i32
  }
  func.func @transform_7(%arg0: i32, %arg1: i32) -> (i32, i32, i32) {
    %c0_i32 = arith.constant 0 : i32
    %c0_i32_0 = arith.constant 0 : i32
    %c0_i32_1 = arith.constant 0 : i32
    return %arg1, %c0_i32, %c0_i32_0 : i32, i32, i32
  }
  func.func @transform_8(%arg0: i32, %arg1: i32) -> (i32, i32, i32, i32) {
    %c0_i32 = arith.constant 0 : i32
    %c0_i32_0 = arith.constant 0 : i32
    %c0_i32_1 = arith.constant 0 : i32
    %c0_i32_2 = arith.constant 0 : i32
    return %arg1, %c0_i32, %c0_i32_0, %c0_i32_1 : i32, i32, i32, i32
  }
  func.func @transform_9(%arg0: i32, %arg1: i32) -> (i32, i32, i32, i32) {
    %c0_i32 = arith.constant 0 : i32
    %c0_i32_0 = arith.constant 0 : i32
    %c0_i32_1 = arith.constant 0 : i32
    %c0_i32_2 = arith.constant 0 : i32
    return %arg1, %c0_i32, %c0_i32_0, %c0_i32_1 : i32, i32, i32, i32
  }
  func.func @transform_10(%arg0: i32, %arg1: i32) -> (i32, i32, i32, i32) {
    %c0_i32 = arith.constant 0 : i32
    %c0_i32_0 = arith.constant 0 : i32
    %c0_i32_1 = arith.constant 0 : i32
    %c0_i32_2 = arith.constant 0 : i32
    return %arg1, %c0_i32, %c0_i32_0, %c0_i32_1 : i32, i32, i32, i32
  }
  func.func @transform_11(%arg0: i32, %arg1: i32) -> (i32, i32, i32, i32) {
    %c0_i32 = arith.constant 0 : i32
    %c0_i32_0 = arith.constant 0 : i32
    %c0_i32_1 = arith.constant 0 : i32
    %c0_i32_2 = arith.constant 0 : i32
    return %arg1, %c0_i32, %c0_i32_0, %c0_i32_1 : i32, i32, i32, i32
  }
  func.func @transform_12(%arg0: i32, %arg1: i32) -> (i32, i32, i32, i32) {
    %c0_i32 = arith.constant 0 : i32
    %c0_i32_0 = arith.constant 0 : i32
    %c0_i32_1 = arith.constant 0 : i32
    %c0_i32_2 = arith.constant 0 : i32
    return %arg1, %c0_i32, %c0_i32_0, %c0_i32_1 : i32, i32, i32, i32
  }
  func.func @transform_13(%arg0: i32, %arg1: i32) -> (i32, i32, i32) {
    %c0_i32 = arith.constant 0 : i32
    %c0_i32_0 = arith.constant 0 : i32
    %c0_i32_1 = arith.constant 0 : i32
    return %arg1, %c0_i32, %c0_i32_0 : i32, i32, i32
  }
  func.func @transform_14(%arg0: i32, %arg1: i32) -> (i32, i32, i32) {
    %c0_i32 = arith.constant 0 : i32
    %c0_i32_0 = arith.constant 0 : i32
    %c0_i32_1 = arith.constant 0 : i32
    return %arg1, %c0_i32, %c0_i32_0 : i32, i32, i32
  }
  func.func @transform_15(%arg0: i32, %arg1: i32) -> (i32, i32, i32) {
    %c0_i32 = arith.constant 0 : i32
    %c0_i32_0 = arith.constant 0 : i32
    %c0_i32_1 = arith.constant 0 : i32
    return %arg1, %c0_i32, %c0_i32_0 : i32, i32, i32
  }
  func.func @transform_16(%arg0: i32, %arg1: i32) -> (i32, i32, i32) {
    %c0_i32 = arith.constant 0 : i32
    %c0_i32_0 = arith.constant 0 : i32
    %c0_i32_1 = arith.constant 0 : i32
    return %arg1, %c0_i32, %c0_i32_0 : i32, i32, i32
  }
  func.func @transform_17(%arg0: i32, %arg1: i32) -> (i32, i32, i32) {
    %c0_i32 = arith.constant 0 : i32
    %c0_i32_0 = arith.constant 0 : i32
    %c0_i32_1 = arith.constant 0 : i32
    return %arg1, %c0_i32, %c0_i32_0 : i32, i32, i32
  }
  func.func @transform_18(%arg0: i32, %arg1: i32) -> (i32, i32, i32) {
    %c0_i32 = arith.constant 0 : i32
    %c0_i32_0 = arith.constant 0 : i32
    %c0_i32_1 = arith.constant 0 : i32
    return %arg1, %c0_i32, %c0_i32_0 : i32, i32, i32
  }
  func.func @transform_19(%arg0: i32, %arg1: i32) -> (i32, i32, i32) {
    %c0_i32 = arith.constant 0 : i32
    %c0_i32_0 = arith.constant 0 : i32
    %c0_i32_1 = arith.constant 0 : i32
    return %arg1, %c0_i32, %c0_i32_0 : i32, i32, i32
  }
  func.func @transform_20(%arg0: i32, %arg1: i32) -> (i32, i32, i32) {
    %c0_i32 = arith.constant 0 : i32
    %c0_i32_0 = arith.constant 0 : i32
    %c0_i32_1 = arith.constant 0 : i32
    return %arg0, %c0_i32, %c0_i32_0 : i32, i32, i32
  }
}

</mosaic_0001>

<bundles_post_ra>
// kernel: crossmodal_transformer_forward.3
= control target key start
LH: loop header
LB: loop body
LE: loop exit
PB: predicated region body
PF: predicated region fallthrough
CT: control target
= control target key end

     0   :  { %s3933_s0 = inlined_call_operand.vmem [shape: f32[2,8,32], index: 0, kind: input, shape index: {}]   ;;  %s3934_s1 = inlined_call_operand.vmem [shape: f32[8,8], index: 1, kind: input, shape index: {}]   ;;  %s3935_s2 = inlined_call_operand.vmem [shape: f32[2,8,1], index: 2, kind: input, shape index: {}]   ;;  %s3936_s3 = inlined_call_operand.vmem [shape: f32[2,1,32], index: 3, kind: input, shape index: {}]   ;;  %s3937_s4 = inlined_call_operand.vmem [shape: f32[2,1,32], index: 4, kind: input, shape index: {}]   ;;  %s3938_s5 = inlined_call_operand.vmem [shape: f32[2,1,32], index: 5, kind: input, shape index: {}]   ;;  %s3939_s6 = inlined_call_operand.vmem [shape: f32[2,1,32], index: 6, kind: input, shape index: {}]   ;;  %s3940_s7 = inlined_call_operand.vmem [shape: bf16[2,4,32,8], index: 7, kind: input, shape index: {}]   ;;  %s3941_s8 = inlined_call_operand.vmem [shape: f32[2,4,1,8], index: 8, kind: input, shape index: {}]   ;;  %s3942_s9 = inlined_call_operand.vmem [shape: bf16[2,8,32,8], index: 9, kind: input, shape index: {}]   ;;  %s3943_s10 = inlined_call_operand.vmem [shape: f32[2,8,1,8], index: 10, kind: input, shape index: {}]   ;;  %s3944_s11 = inlined_call_operand.vmem [shape: bf16[2,4,8,32], index: 11, kind: input, shape index: {}]   ;;  %s3945_s12 = inlined_call_operand.vmem [shape: f32[2,1,32], index: 12, kind: input, shape index: {}]   ;;  %s3946_s13 = inlined_call_operand.vmem [shape: f32[2,1,32], index: 13, kind: input, shape index: {}]   ;;  %s3947_s14 = inlined_call_operand.vmem [shape: f32[2,1,32], index: 14, kind: input, shape index: {}]   ;;  %s3948_s15 = inlined_call_operand.vmem [shape: bf16[2,32,32], index: 15, kind: input, shape index: {}]   ;;  %s3949_s16 = inlined_call_operand.vmem [shape: f32[2,1,32], index: 16, kind: input, shape index: {}]   ;;  %s3950_s17 = inlined_call_operand.vmem [shape: bf16[2,32,32], index: 17, kind: input, shape index: {}]   ;;  %s3951_s18 = inlined_call_operand.vmem [shape: f32[2,1,32], index: 18, kind: input, shape index: {}]   ;;  %s3952_s19 = inlined_call_operand.hbm [shape: f32[2,8,32], index: 19, kind: output, shape index: {}]  }
   0x1   :  { %3969 = sst [smem:[#allocation21_spill]] %s3933_s0 }
   0x2   :  { %3970 = sst [smem:[#allocation22_spill]] %s3934_s1 }
   0x3   :  { %3971 = sst [smem:[#allocation23_spill]] %s3935_s2 }
   0x4   :  { %3972 = sst [smem:[#allocation24_spill]] %s3936_s3 }
   0x5   :  { %3973 = sst [smem:[#allocation25_spill]] %s3940_s7 }
   0x6   :  { %3974 = sst [smem:[#allocation26_spill]] %s3941_s8 }
   0x7   :  { %3975 = sst [smem:[#allocation27_spill]] %s3942_s9 }
   0x8   :  { %3976 = sst [smem:[#allocation28_spill]] %s3943_s10 }
   0x9   :  { %3977 = sst [smem:[#allocation29_spill]] %s3944_s11 }
   0xa   :  { %3978 = sst [smem:[#allocation30_spill]] %s3945_s12 }
   0xb   :  { %3979 = sst [smem:[#allocation31_spill]] %s3946_s13 }
   0xc   :  { %3980 = sst [smem:[#allocation32_spill]] %s3948_s15 }
   0xd   :  { %3981 = sst [smem:[#allocation33_spill]] %s3949_s16 }
   0xe   :  { %3982 = sst [smem:[#allocation34_spill]] %s3950_s17 }
   0xf   :  { %3983 = sst [smem:[#allocation35_spill]] %s3951_s18 }
  0x10   :  { %3984 = sst [smem:[#allocation36_spill]] %s3952_s19 }
  0x11   :  { %24 = vsyncpa [#allocation4], 0 }
  0x12   :  { %26 = vsyncpa [#allocation4 + $0x1], 0  ;;  %s3468_s0 = smov 0   ;;  %s3470_s30 = smov 0  }
  0x13   :  { %s3472_s20 = smov 0   ;;  %s3474_s21 = smov 0  }
  0x14   :  { %s3476_s1 = smov 0   ;;  %s3478_s22 = smov 0  }
  0x15   :  { %s3480_s2 = smov 0   ;;  %s3482_s23 = smov 0  }
  0x16 LB: > { %3985 = sst [smem:[#allocation6_spill]] %s3334_s0  ;;  %s2789_s24 = sadd.s32 4294967295, %s3362_s23   ;;  %s3362_s23 = sphi %s3482_s23, %s32_s23   ;;  %s3358_s2 = sphi %s3480_s2, %s4046_s2   ;;  %s3354_s22 = sphi %s3478_s22, %s4045_s22   ;;  %s3350_s1 = sphi %s3476_s1, %s4044_s1   ;;  %s3346_s21 = sphi %s3474_s21, %s4043_s21   ;;  %s3342_s20 = sphi %s3472_s20, %s4042_s20   ;;  %s3338_s30 = sphi %s3470_s30, %s4041_s30   ;;  %s3334_s0 = sphi %s3468_s0, %s4040_s0  }
  0x17   : > { %3986 = sst [smem:[#allocation7_spill]] %s3338_s30  ;;  %s2790_s25 = sadd.s32 4294967294, %s3362_s23  }
  0x18   : > { %3987 = sst [smem:[#allocation8_spill]] %s3342_s20  ;;  %s41_s3 = sadd.s32 1, %s3354_s22 }
  0x19   : > { %3988 = sst [smem:[#allocation9_spill]] %s3346_s21  ;;  %p42_p0 = scmp.ge.s32.totalorder %s41_s3, 2 }
  0x1a   : > { %3989 = sst [smem:[#allocation10_spill]] %s3350_s1  ;;  %s44_s26 = sadd.s32 1, %s3358_s2 }
  0x1b   : > { %3990 = sst [smem:[#allocation11_spill]] %s3354_s22  ;;  %p550_p1 = scmp.ne.s32.totalorder %s3342_s20, %s3338_s30 }
  0x1c   : > { %3991 = sst [smem:[#allocation12_spill]] %s3358_s2  ;;  %p551_p2 = scmp.eq.s32.totalorder %s2789_s24, 3 }
  0x1d   : > { %3992 = sst [smem:[#allocation13_spill]] %s3362_s23  ;;  %s4048_s3 = smov (%p42_p0, %s41_s3), 0 }
  0x1e   : > { %3993 = sst [smem:[#allocation14_spill]] %s4048_s3  ;;  %s4050_s26 = smov (!%p42_p0, %s44_s26), %s3358_s2 }
  0x1f   : > { %p3517_p3 = por %p551_p2, %p550_p1  ;;  %p556_p4 = scmp.ne.s32.totalorder %s3338_s30, %s3334_s0 }
  0x20   : > { %p46_p5 = scmp.ge.s32.totalorder %s4050_s26, 2  ;;  %p557_p6 = scmp.eq.s32.totalorder %s2790_s25, 3 }
  0x21   : > { %s3994_s27 = scalar_select %p3517_p3, 1, 0 }
  0x22   : > { %p2793_p7 = scmp.ge.s32.totalorder %s3362_s23, 1  ;;  %p700_p8 = scmp.lt.s32.totalorder %s3362_s23, 5 }
  0x23   : > { %3995 = sst [smem:[#allocation15_spill]] %s3994_s27  ;;  %s4052_s26 = smov (%p46_p5, %s4050_s26), 0 }
  0x24   : > { %3996 = sst [smem:[#allocation16_spill]] %s4052_s26  ;;  %p3527_p9 = por %p557_p6, %p556_p4 }
  0x25   : > { %p701_p10 = pnand %p2793_p7, %p700_p8  ;;  %s537_s29 = ssub.s32 %s3358_s2, %s4052_s26 }
  0x26   : > { %s3997_s28 = scalar_select %p3527_p9, 1, 0 }
  0x27   : > { %s540_s24 = sadd.s32 1, %s3342_s20  ;;  %p538_p11 = scmp.eq.s32.totalorder %s537_s29, 0 }
  0x28   : > { %3998 = sst [smem:[#allocation17_spill]] %s3997_s28  ;;  %704 = sbr.rel (%p701_p10) target bundleno = 2292 (0x8f4), region = 96 }
  0x29   : > { %s3535_s3 = scalar_select %p538_p11, %s3342_s20, %s540_s24  }
  0x2b   : > { %3999 = sst [smem:[#allocation18_spill]] %s3535_s3 }
  0x2d   : > { %s3958_s25 = sand.u32 1, %s3338_s30   ;;  %p819_p12 = scmp.lt.s32.totalorder %s3350_s1, 1 }
  0x2e   : > { %s3541_s22 = sshll.u32 %s3958_s25, 3  ;;  %p827_p13 = scmp.lt.s32.totalorder %s3346_s21, 1 }
  0x2f   : > { %s820_s28 = scalar_select %p819_p12, %s3350_s1, 1 }
  0x30   : > { %s3546_s0 = scalar_select %p827_p13, %s3346_s21, 1 }
  0x31   : > { %s2795_s29 = sshll.u32 %s820_s28, 3  ;;  %s4000_s2 = sld [smem:[#allocation21_spill]] }
  0x32   : > { %s4001_s23 = sld [smem:[#allocation23_spill]]  ;;  %s2799_s3 = sshll.u32 %s3546_s0, 2 }
  0x33   : > { %s4004_s7 = sld [smem:[#allocation25_spill]]  ;;  %s2891_s15 = sshll.u32 %s3546_s0, 7 }
  0x34   : > { %s4005_s8 = sld [smem:[#allocation26_spill]]  ;;  %s2802_s16 = sshll.u32 %s3546_s0, 3 }
  0x35   : > { %s4006_s9 = sld [smem:[#allocation27_spill]]  ;;  %s2892_s30 = sshll.u32 %s3546_s0, 4 }
  0x36   : > { %s4007_s10 = sld [smem:[#allocation28_spill]]  ;;  %s870_s28 = scalar_lea.vmem %s3947_s14, %s3546_s0 }
  0x37   : > { %s822_s25 = scalar_lea.vmem %s4000_s2, %s2795_s29  ;;  %s4009_s11 = sld [smem:[#allocation29_spill]] }
  0x38   : > { %s3554_s19 = scalar_lea.vmem %s4001_s23, %s2795_s29  ;;  %s2890_s23 = sshll.u32 %s3546_s0, 6 }
  0x39   : > { %4002 = sst [smem:[#allocation19_spill]] %s3554_s19  ;;  %s3577_s1 = scalar_lea.vmem %s4004_s7, %s2890_s23 }
  0x3a   : > { %s3582_s29 = scalar_lea.vmem %s4005_s8, %s2799_s3  ;;  %s4013_s7 = sld [smem:[#allocation33_spill]] }
  0x3b   : > { %s3589_s24 = scalar_lea.vmem %s4006_s9, %s2891_s15  ;;  %s4012_s9 = sld [smem:[#allocation32_spill]] }
  0x3c   : > { %s3594_s21 = scalar_lea.vmem %s4007_s10, %s2802_s16  ;;  %s4015_s26 = sld [smem:[#allocation35_spill]] }
  0x3d   : > { %s3604_s18 = scalar_lea.vmem %s4009_s11, %s2892_s30  ;;  %s4014_s11 = sld [smem:[#allocation34_spill]] }
  0x3e   : > { %4010 = sst [smem:[#allocation20_spill]] %s3604_s18  ;;  %s818_s15 = scalar_lea.vmem [#allocation3], %s3541_s22 }
  0x3f   : > { %s4016_s2 = sld [smem:[#allocation9_spill]] }
  0x40   : > { %s878_s12 = scalar_lea.vmem %s4013_s7, %s3546_s0 }
  0x41   : > { %s3617_s10 = scalar_lea.vmem %s4012_s9, %s2892_s30 }
  0x42   : > { %s886_s13 = scalar_lea.vmem %s4015_s26, %s3546_s0 }
  0x43   : > { %s3626_s18 = scalar_lea.vmem %s4014_s11, %s2892_s30 }
  0x45   : > { %p2809_p0 = scmp.ne.s32.totalorder %s4016_s2, 0 }
  0x47   : > { %891 = sbr.rel (%p2809_p0) target bundleno = 78 (0x4e), region = 100 }
  0x4c   : > { %v892_v0 = vld [vmem:[%s822_s25] sm:$0xff]  ;;  %vm893_vm0 = vcmask 261120  }
  0x4d   : > { %894 = vst.msk [vmem:[#allocation2] sm:$0xff] %vm893_vm0, %v892_v0 }
  0x4e PF: > { %vm898_vm1 = vcmask 261120   ;;  %v3220_v8 = vld [vmem:[%s3577_s1 + $0x8] sm:$0xff]   ;;  %v3221_v9 = vld [vmem:[%s3577_s1 + $0x18] sm:$0xff]   ;;  %v3364_v10 = vmov 0.0   ;;  %v3222_v11 = vld [vmem:[%s3577_s1] sm:$0xff]   ;;  %vm3365_vm2 = vmmov 0   ;;  %s4019_s20 = scalar_lea.vmem %s3937_s4, %s3546_s0  ;;  %s4020_s27 = scalar_lea.vmem %s3938_s5, %s3546_s0 }
  0x4f   : > { %2961 = vmatprep.subr.bf16.mxu0 %v3364_v10  ;;  %2969 = vmatprep.subr.bf16.mxu1 %v3364_v10  ;;  %v3223_v12 = vld [vmem:[%s3577_s1 + $0x10] sm:$0xff]   ;;  %s4017_s11 = sld [smem:[#allocation24_spill]]  ;;  %v2813_v19 = vld [vmem:[%s4019_s20] ss:$0 sm:$0xff]  ;;  %v3224_v22 = vld [vmem:[%s3577_s1 + $0x28] sm:$0xff]   ;;  %s4021_s3 = scalar_lea.vmem %s3939_s6, %s3546_s0  ;;  %vm1734_vm3 = vcmask 64512  }
  0x50   : > { %2962 = vmatpush3.bf16.msra.mxu0 %v3220_v8  ;;  %2970 = vmatpush3.bf16.msra.mxu1 %v3221_v9  ;;  %v3225_v23 = vld [vmem:[%s3577_s1 + $0x38] sm:$0xff]   ;;  %v3226_v25 = vld [vmem:[%s3577_s1 + $0x20] sm:$0xff]   ;;  %v3227_v26 = vld [vmem:[%s3577_s1 + $0x30] sm:$0xff]   ;;  %vm1974_vm4 = vcmask 1043456   ;;  %s4022_s8 = sld [smem:[#allocation22_spill]] }
  0x51   : > { %2963 = vmatprep.subr.bf16.mxu0 %v3364_v10  ;;  %2971 = vmatprep.subr.bf16.mxu1 %v3364_v10  ;;  %v2810_v27 = vld [vmem:[%s4020_s27] ss:$0 sm:$0xff]  ;;  %v3228_v28 = vld [vmem:[%s3589_s24 + $0x8] sm:$0xff]   ;;  %v3229_v29 = vld [vmem:[%s3589_s24 + $0x18] sm:$0xff]   ;;  %s4023_s19 = sld [smem:[#allocation20_spill]] }
  0x52   : > { %2965 = vmatprep.mubr.msk.bf16.mxu0 %vm3365_vm2, %v3364_v10  ;;  %2973 = vmatprep.mubr.msk.bf16.mxu1 %vm3365_vm2, %v3364_v10  ;;  %v2811_v31 = vld [vmem:[%s4021_s3] ss:$0 sm:$0xff]  ;;  %v3231_v33 = vld [vmem:[%s3589_s24 + $0x10] sm:$0xff]   ;;  %v3232_v35 = vld [vmem:[%s3589_s24 + $0x28] sm:$0xff]   ;;  %s4024_s7 = sld [smem:[#allocation30_spill]] }
  0x53   : > { %v3230_v32 = vld [vmem:[%s3589_s24] sm:$0xff]   ;;  %v3233_v36 = vld [vmem:[%s3589_s24 + $0x38] sm:$0xff]   ;;  %v3235_v39 = vld [vmem:[%s3589_s24 + $0x30] sm:$0xff]   ;;  %s4027_s26 = sld [smem:[#allocation31_spill]] }
  0x54   : > { %v895_v1 = vld [vmem:[#allocation2] sm:$0xff]  ;;  %2964 = vmatpush3.bf16.msra.mxu0 %v3222_v11  ;;  %2972 = vmatpush3.bf16.msra.mxu1 %v3223_v12  ;;  %v3236_v40 = vld [vmem:[%s3589_s24 + $0x48] sm:$0xff]   ;;  %v3237_v41 = vld [vmem:[%s3589_s24 + $0x58] sm:$0xff]   ;;  %s4031_s17 = sld [smem:[#allocation9_spill]] }
  0x55   : > { %v899_v2 = vsel %vm898_vm1, %v895_v1, 0.0  ;;  %2977 = vmatprep.subr.bf16.mxu0 %v3364_v10  ;;  %2985 = vmatprep.subr.bf16.mxu1 %v3364_v10  ;;  %s4018_s25 = scalar_lea.vmem %s4017_s11, %s3546_s0  ;;  %v3234_v38 = vld [vmem:[%s3589_s24 + $0x20] sm:$0xff]   ;;  %v3239_v43 = vld [vmem:[%s3589_s24 + $0x50] sm:$0xff]   ;;  %v3240_v44 = vld [vmem:[%s3589_s24 + $0x68] sm:$0xff]   ;;  %s4026_s11 = sld [smem:[#allocation19_spill]] }
  0x56   : > { %900 = vadd.xlane.f32.xlu0 %v899_v2  ;;  %v2812_v17 = vld [vmem:[%s4018_s25] ss:$0 sm:$0xff]  ;;  %v3241_v45 = vld [vmem:[%s3589_s24 + $0x78] sm:$0xff]   ;;  %v3243_v47 = vld [vmem:[%s3589_s24 + $0x70] sm:$0xff]  }
  0x57   : > { %v3238_v42 = vld [vmem:[%s3589_s24 + $0x40] sm:$0xff]  }
  0x58   : > { %v3242_v46 = vld [vmem:[%s3589_s24 + $0x60] sm:$0xff]   ;;  %s4025_s9 = scalar_lea.vmem %s4024_s7, %s3546_s0 }
  0x59   : > { %v2830_v0 = vld [vmem:[%s3594_s21] ss:$0 sm:$0xff]  ;;  %v2815_v12 = vld [vmem:[%s3582_s29 + $0x1] ss:$0 sm:$0xff]  ;;  %s4028_s20 = scalar_lea.vmem %s4027_s26, %s3546_s0 }
  0x5a   : > { %v2814_v11 = vld [vmem:[%s3582_s29] ss:$0 sm:$0xff]  ;;  %p2885_p1 = scmp.ne.s32.totalorder %s4031_s17, 1 }
  0xdf   : > { %v901_v3 = vpop.xlane.xlu0 %900 }
  0xe0   : > { %v903_v4 = vmul.f32 0.03125, %v901_v3 }
  0xe2   : > { %v904_v5 = vsub.f32 %v895_v1, %v903_v4  ;;  %v2831_v1 = vld [vmem:[%s3594_s21 + $0x1] ss:$0 sm:$0xff] }
  0xe4   : > { %v905_v6 = vmul.f32 %v904_v5, %v904_v5 }
  0xe6   : > { %v906_v7 = vsel %vm898_vm1, %v905_v6, 0.0 }
  0xe7   : > { %907 = vadd.xlane.f32.xlu0 %v906_v7 }
 0x170   : > { %v908_v13 = vpop.xlane.xlu0 %907 }
 0x171   : > { %v909_v14 = vmul.f32 0.03125, %v908_v13 }
 0x173   : > { %v910_v15 = vadd.f32 1e-08, %v909_v14 }
 0x175   : > { %3248 = vrsqrt.f32 %v910_v15 }
 0x182   : > { %v3249_v16 = vpop.eup %3248 }
 0x183   : > { %v912_v18 = vmul.f32 %v3249_v16, %v904_v5 }
 0x185   : > { %v1014_v20 = vmul.f32 %v2812_v17, %v912_v18  ;;  %v919_v30 = vmul.f32 %v2810_v27, %v912_v18 }
 0x187   : > { %v3660_v21 = vadd.f32 %v2813_v19, %v1014_v20  ;;  %v926_v34 = vadd.f32 %v2811_v31, %v919_v30  ;;  %v2832_v19 = vld [vmem:[%s3594_s21 + $0x2] ss:$0 sm:$0xff]  ;;  %v2833_v20 = vld [vmem:[%s3594_s21 + $0x3] ss:$0 sm:$0xff] }
 0x189   : > { %v1022_v24 = vpack.c.bf16 %v3660_v21, %v3660_v21  ;;  %v1023_v37 = vpack.c.bf16 %v926_v34, %v926_v34  ;;  %v2816_v34 = vld [vmem:[%s3582_s29 + $0x2] ss:$0 sm:$0xff] }
 0x18b   : > { %2966 = vmatmul.mubr.msk.bf16.vlgmr.msra.gmra.mxu0 %vm898_vm1, %v1022_v24  ;;  %2974 = vmatmul.mubr.msk.bf16.vlgmr.msra.gmra.mxu1 %vm898_vm1, %v1022_v24 }
 0x18c   : > { %2978 = vmatpush3.bf16.msra.mxu0 %v3224_v22  ;;  %2986 = vmatpush3.bf16.msra.mxu1 %v3225_v23 }
 0x18d   : > { %2979 = vmatprep.subr.bf16.mxu0 %v3364_v10  ;;  %2987 = vmatprep.subr.bf16.mxu1 %v3364_v10 }
 0x18e   : > { %2981 = vmatprep.mubr.msk.bf16.mxu0 %vm3365_vm2, %v3364_v10  ;;  %2989 = vmatprep.mubr.msk.bf16.mxu1 %vm3365_vm2, %v3364_v10 }
 0x190   : > { %2980 = vmatpush3.bf16.msra.mxu0 %v3226_v25  ;;  %2988 = vmatpush3.bf16.msra.mxu1 %v3227_v26 }
 0x191   : > { %2993 = vmatprep.subr.bf16.mxu0 %v3364_v10  ;;  %3001 = vmatprep.subr.bf16.mxu1 %v3364_v10 }
 0x193   : > { %2982 = vmatmul.mubr.msk.bf16.vlgmr.msra.gmra.mxu0 %vm898_vm1, %v1022_v24  ;;  %2990 = vmatmul.mubr.msk.bf16.vlgmr.msra.gmra.mxu1 %vm898_vm1, %v1022_v24 }
 0x194   : > { %2994 = vmatpush3.bf16.msra.mxu0 %v3228_v28  ;;  %3002 = vmatpush3.bf16.msra.mxu1 %v3229_v29 }
 0x195   : > { %2995 = vmatprep.subr.bf16.mxu0 %v3364_v10  ;;  %3003 = vmatprep.subr.bf16.mxu1 %v3364_v10 }
 0x196   : > { %2997 = vmatprep.mubr.msk.bf16.mxu0 %vm3365_vm2, %v3364_v10  ;;  %3005 = vmatprep.mubr.msk.bf16.mxu1 %vm3365_vm2, %v3364_v10 }
 0x198   : > { %2996 = vmatpush3.bf16.msra.mxu0 %v3230_v32  ;;  %3004 = vmatpush3.bf16.msra.mxu1 %v3231_v33 }
 0x199   : > { %3009 = vmatprep.subr.bf16.mxu0 %v3364_v10  ;;  %3017 = vmatprep.subr.bf16.mxu1 %v3364_v10 }
 0x19b   : > { %2998 = vmatmul.mubr.msk.bf16.vlgmr.msra.gmra.mxu0 %vm898_vm1, %v1023_v37  ;;  %3006 = vmatmul.mubr.msk.bf16.vlgmr.msra.gmra.mxu1 %vm898_vm1, %v1023_v37 }
 0x19c   : > { %3010 = vmatpush3.bf16.msra.mxu0 %v3232_v35  ;;  %3018 = vmatpush3.bf16.msra.mxu1 %v3233_v36  ;;  %v2817_v35 = vld [vmem:[%s3582_s29 + $0x3] ss:$0 sm:$0xff] }
 0x19d   : > { %3011 = vmatprep.subr.bf16.mxu0 %v3364_v10  ;;  %3019 = vmatprep.subr.bf16.mxu1 %v3364_v10 }
 0x19e   : > { %3013 = vmatprep.mubr.msk.bf16.mxu0 %vm3365_vm2, %v3364_v10  ;;  %3021 = vmatprep.mubr.msk.bf16.mxu1 %vm3365_vm2, %v3364_v10 }
 0x1a0   : > { %3012 = vmatpush3.bf16.msra.mxu0 %v3234_v38  ;;  %3020 = vmatpush3.bf16.msra.mxu1 %v3235_v39 }
 0x1a1   : > { %3025 = vmatprep.subr.bf16.mxu0 %v3364_v10  ;;  %3033 = vmatprep.subr.bf16.mxu1 %v3364_v10 }
 0x1a3   : > { %3014 = vmatmul.mubr.msk.bf16.vlgmr.msra.gmra.mxu0 %vm898_vm1, %v1023_v37  ;;  %3022 = vmatmul.mubr.msk.bf16.vlgmr.msra.gmra.mxu1 %vm898_vm1, %v1023_v37 }
 0x1a4   : > { %3026 = vmatpush3.bf16.msra.mxu0 %v3236_v40  ;;  %3034 = vmatpush3.bf16.msra.mxu1 %v3237_v41 }
 0x1a5   : > { %3027 = vmatprep.subr.bf16.mxu0 %v3364_v10  ;;  %3035 = vmatprep.subr.bf16.mxu1 %v3364_v10 }
 0x1a6   : > { %3029 = vmatprep.mubr.msk.bf16.mxu0 %vm3365_vm2, %v3364_v10  ;;  %3037 = vmatprep.mubr.msk.bf16.mxu1 %vm3365_vm2, %v3364_v10 }
 0x1a8   : > { %3028 = vmatpush3.bf16.msra.mxu0 %v3238_v42  ;;  %3036 = vmatpush3.bf16.msra.mxu1 %v3239_v43  ;;  %v2834_v42 = vld [vmem:[%s3594_s21 + $0x4] ss:$0 sm:$0xff]  ;;  %v2835_v43 = vld [vmem:[%s3594_s21 + $0x5] ss:$0 sm:$0xff] }
 0x1a9   : > { %3041 = vmatprep.subr.bf16.mxu0 %v3364_v10  ;;  %3049 = vmatprep.subr.bf16.mxu1 %v3364_v10 }
 0x1ab   : > { %3030 = vmatmul.mubr.msk.bf16.vlgmr.msra.gmra.mxu0 %vm898_vm1, %v1023_v37  ;;  %3038 = vmatmul.mubr.msk.bf16.vlgmr.msra.gmra.mxu1 %vm898_vm1, %v1023_v37 }
 0x1ac   : > { %3042 = vmatpush3.bf16.msra.mxu0 %v3240_v44  ;;  %3050 = vmatpush3.bf16.msra.mxu1 %v3241_v45 }
 0x1ad   : > { %3043 = vmatprep.subr.bf16.mxu0 %v3364_v10  ;;  %3051 = vmatprep.subr.bf16.mxu1 %v3364_v10 }
 0x1ae   : > { %3045 = vmatprep.mubr.msk.bf16.mxu0 %vm3365_vm2, %v3364_v10  ;;  %3053 = vmatprep.mubr.msk.bf16.mxu1 %vm3365_vm2, %v3364_v10 }
 0x1b0   : > { %3044 = vmatpush3.bf16.msra.mxu0 %v3242_v46  ;;  %3052 = vmatpush3.bf16.msra.mxu1 %v3243_v47 }
 0x1b1   : > { %3057 = vmatprep.subr.bf16.mxu0 %v3364_v10  ;;  %3063 = vmatprep.subr.bf16.mxu1 %v3364_v10 }
 0x1b3   : > { %3046 = vmatmul.mubr.msk.bf16.vlgmr.msra.gmra.mxu0 %vm898_vm1, %v1023_v37  ;;  %3054 = vmatmul.mubr.msk.bf16.vlgmr.msra.gmra.mxu1 %vm898_vm1, %v1023_v37 }
 0x1b4   : > { %3059 = vmatprep.mubr.msk.bf16.mxu0 %vm3365_vm2, %v3364_v10  ;;  %3065 = vmatprep.mubr.msk.bf16.mxu1 %vm3365_vm2, %v3364_v10 }
 0x24b   : > { %v1097_v48 = vpop.f32.mrf.mxu0  ;;  %v1149_v49 = vpop.f32.mrf.mxu1 }
 0x24c   : > { %v1098_v22 = vadd.f32 %v2814_v11, %v1097_v48  ;;  %v1150_v23 = vadd.f32 %v2815_v12, %v1149_v49 }
 0x24d   : > { %v2967_v50 = vpop.f32.mrf.mxu0  ;;  %v2975_v51 = vpop.f32.mrf.mxu1 }
 0x24e   : > { %v1726_v30 = vpack.c.bf16 %v1098_v22, %v1098_v22  ;;  %v1727_v31 = vpack.c.bf16 %v1150_v23, %v1150_v23 }
 0x24f   : > { %v1100_v52 = vpop.f32.mrf.mxu0  ;;  %v1152_v53 = vpop.f32.mrf.mxu1 }
 0x251   : > { %v2968_v54 = vpop.f32.mrf.mxu0  ;;  %v2976_v55 = vpop.f32.mrf.mxu1 }
 0x253   : > { %v1201_v56 = vpop.f32.mrf.mxu0  ;;  %v1253_v57 = vpop.f32.mrf.mxu1 }
 0x254   : > { %v1202_v44 = vadd.f32 %v2816_v34, %v1201_v56  ;;  %v1254_v45 = vadd.f32 %v2817_v35, %v1253_v57 }
 0x255   : > { %v2983_v58 = vpop.f32.mrf.mxu0  ;;  %v2991_v59 = vpop.f32.mrf.mxu1 }
 0x256   : > { %v1728_v52 = vpack.c.bf16 %v1202_v44, %v1202_v44  ;;  %v1729_v53 = vpack.c.bf16 %v1254_v45, %v1254_v45 }
 0x257   : > { %v1204_v60 = vpop.f32.mrf.mxu0  ;;  %v1256_v61 = vpop.f32.mrf.mxu1 }
 0x259   : > { %v2984_v62 = vpop.f32.mrf.mxu0  ;;  %v2992_v63 = vpop.f32.mrf.mxu1 }
 0x25b   : > { %v1356_v2 = vpop.f32.mrf.mxu0  ;;  %v1408_v3 = vpop.f32.mrf.mxu1 }
 0x25c   : > { %v1357_v4 = vadd.f32 %v2830_v0, %v1356_v2  ;;  %v1409_v5 = vadd.f32 %v2831_v1, %v1408_v3 }
 0x25d   : > { %v2999_v6 = vpop.f32.mrf.mxu0  ;;  %v3007_v7 = vpop.f32.mrf.mxu1 }
 0x25e   : > { %v1730_v8 = vpack.c.bf16 %v1357_v4, %v1357_v4  ;;  %v1731_v9 = vpack.c.bf16 %v1409_v5, %v1409_v5  ;;  %v927_v6 = vld [vmem:[%s4022_s8] sm:$0xff] }
 0x25f   : > { %v1359_v13 = vpop.f32.mrf.mxu0  ;;  %v1411_v14 = vpop.f32.mrf.mxu1 }
 0x260   : > { %v1739_v15 = vsel %vm1734_vm3, %v1730_v8, 0  ;;  %v1785_v16 = vsel %vm1734_vm3, %v1731_v9, 0 }
 0x261   : > { %v3000_v17 = vpop.f32.mrf.mxu0  ;;  %v3008_v18 = vpop.f32.mrf.mxu1  ;;  %3058 = vmatpush3.bf16.xpose.msra.mxu0 %v1739_v15  ;;  %3064 = vmatpush3.bf16.xpose.msra.mxu1 %v1785_v16 }
 0x262   : > { %3069 = vmatprep.subr.bf16.mxu0 %v3364_v10  ;;  %3075 = vmatprep.subr.bf16.mxu1 %v3364_v10 }
 0x263   : > { %v1460_v24 = vpop.f32.mrf.mxu0  ;;  %v1512_v25 = vpop.f32.mrf.mxu1 }
 0x264   : > { %v1461_v26 = vadd.f32 %v2832_v19, %v1460_v24  ;;  %v1513_v27 = vadd.f32 %v2833_v20, %v1512_v25 }
 0x265   : > { %v3015_v28 = vpop.f32.mrf.mxu0  ;;  %v3023_v29 = vpop.f32.mrf.mxu1 }
 0x266   : > { %v1732_v32 = vpack.c.bf16 %v1461_v26, %v1461_v26  ;;  %v1733_v33 = vpack.c.bf16 %v1513_v27, %v1513_v27 }
 0x267   : > { %v1463_v36 = vpop.f32.mrf.mxu0  ;;  %v1515_v37 = vpop.f32.mrf.mxu1 }
 0x268   : > { %v1831_v38 = vsel %vm1734_vm3, %v1732_v32, 0  ;;  %v1877_v39 = vsel %vm1734_vm3, %v1733_v33, 0  ;;  %3060 = vmatmul.mubr.msk.bf16.vlgmr.msra.gmra.mxu0 %vm1734_vm3, %v1726_v30  ;;  %3066 = vmatmul.mubr.msk.bf16.vlgmr.msra.gmra.mxu1 %vm1734_vm3, %v1727_v31 }
 0x269   : > { %v3016_v40 = vpop.f32.mrf.mxu0  ;;  %v3024_v41 = vpop.f32.mrf.mxu1  ;;  %3070 = vmatpush3.bf16.xpose.msra.mxu0 %v1831_v38  ;;  %3076 = vmatpush3.bf16.xpose.msra.mxu1 %v1877_v39 }
 0x26a   : > { %3071 = vmatprep.mubr.msk.bf16.mxu0 %vm3365_vm2, %v3364_v10  ;;  %3077 = vmatprep.mubr.msk.bf16.mxu1 %vm3365_vm2, %v3364_v10 }
 0x26b   : > { %v1564_v46 = vpop.f32.mrf.mxu0  ;;  %v1616_v47 = vpop.f32.mrf.mxu1  ;;  %3081 = vmatprep.subr.bf16.mxu0 %v3364_v10  ;;  %3087 = vmatprep.subr.bf16.mxu1 %v3364_v10 }
 0x26c   : > { %v1565_v48 = vadd.f32 %v2834_v42, %v1564_v46  ;;  %v1617_v49 = vadd.f32 %v2835_v43, %v1616_v47 }
 0x26d   : > { %v3031_v50 = vpop.f32.mrf.mxu0  ;;  %v3039_v51 = vpop.f32.mrf.mxu1 }
 0x26e   : > { %v1967_v54 = vpack.c.bf16 %v1565_v48, %v1565_v48  ;;  %v1968_v55 = vpack.c.bf16 %v1617_v49, %v1617_v49 }
 0x26f   : > { %v1567_v56 = vpop.f32.mrf.mxu0  ;;  %v1619_v57 = vpop.f32.mrf.mxu1 }
 0x270   : > { %v1976_v58 = vsel %vm1974_vm4, %v1967_v54, 0  ;;  %v2022_v59 = vsel %vm1974_vm4, %v1968_v55, 0  ;;  %3072 = vmatmul.mubr.msk.bf16.vlgmr.msra.gmra.mxu0 %vm1734_vm3, %v1728_v52  ;;  %3078 = vmatmul.mubr.msk.bf16.vlgmr.msra.gmra.mxu1 %vm1734_vm3, %v1729_v53  ;;  %v2836_v55 = vld [vmem:[%s3594_s21 + $0x6] ss:$0 sm:$0xff] }
 0x271   : > { %v3032_v60 = vpop.f32.mrf.mxu0  ;;  %v3040_v61 = vpop.f32.mrf.mxu1  ;;  %3082 = vmatpush3.bf16.msra.mxu0 %v1976_v58  ;;  %3088 = vmatpush3.bf16.msra.mxu1 %v2022_v59  ;;  %v2837_v59 = vld [vmem:[%s3594_s21 + $0x7] ss:$0 sm:$0xff] }
 0x272   : > { %3083 = vmatprep.mubr.msk.bf16.mxu0 %vm3365_vm2, %v3364_v10  ;;  %3093 = vmatprep.subr.bf16.mxu0 %v3364_v10 }
 0x273   : > { %v3781_v62 = vpop.f32.mrf.mxu0  ;;  %v3783_v63 = vpop.f32.mrf.mxu1  ;;  %3089 = vmatprep.mubr.msk.bf16.mxu1 %vm3365_vm2, %v3364_v10  ;;  %3099 = vmatprep.subr.bf16.mxu1 %v3364_v10 }
 0x274   : > { %v1669_v58 = vadd.f32 %v2836_v55, %v3781_v62  ;;  %v2874_v55 = vld [vmem:[%s4025_s9] ss:$0 sm:$0xff] }
 0x275   : > { %v3047_v0 = vpop.f32.mrf.mxu0  ;;  %v3055_v1 = vpop.f32.mrf.mxu1 }
 0x276   : > { %v1969_v61 = vpack.c.bf16 %v1669_v58, %v1669_v58  ;;  %v1721_v0 = vadd.f32 %v2837_v59, %v3783_v63 }
 0x277   : > { %v1671_v2 = vpop.f32.mrf.mxu0  ;;  %v1723_v3 = vpop.f32.mrf.mxu1 }
 0x279   : > { %v3048_v4 = vpop.f32.mrf.mxu0  ;;  %v3056_v5 = vpop.f32.mrf.mxu1 }
 0x27a   : > { %v2068_v4 = vsel %vm1974_vm4, %v1969_v61, 0  ;;  %v1970_v5 = vpack.c.bf16 %v1721_v0, %v1721_v0 }
 0x27c   : > { %v2114_v63 = vsel %vm1974_vm4, %v1970_v5, 0 }
 0x328   : > { %v1775_v7 = vpop.f32.mrf.mxu0  ;;  %v1821_v8 = vpop.f32.mrf.mxu1 }
 0x329   : > { %v1776_v9 = vadd.f32 %v1775_v7, %v927_v6  ;;  %v1822_v13 = vadd.f32 %v1821_v8, %v927_v6 }
 0x32a   : > { %v3061_v11 = vpop.f32.mrf.mxu0  ;;  %v3067_v12 = vpop.f32.mrf.mxu1 }
 0x32b   : > { %v1919_v14 = vsel %vm1734_vm3, %v1776_v9, -inf  ;;  %v1922_v19 = vsel %vm1734_vm3, %v1822_v13, -inf }
 0x32c   : > { %v1824_v15 = vpop.f32.mrf.mxu1  ;;  %1920 = vmax.xlane.f32.xlu1 %v1919_v14  ;;  %v1778_v16 = vpop.f32.mrf.mxu0 }
 0x32d   : > { %v992_v16 = vld [vmem:[%s4023_s19 + $0x4] sm:$0xf] }
 0x32e   : > { %v3062_v17 = vpop.f32.mrf.mxu0  ;;  %v3068_v18 = vpop.f32.mrf.mxu1 }
 0x32f   : > { %v2210_v17 = vsel %vm1974_vm4, %v992_v16, 0  ;;  %v993_v18 = vld [vmem:[%s4023_s19 + $0x8] sm:$0xf] }
 0x330   : > { %v1913_v20 = vpop.f32.mrf.mxu1  ;;  %1923 = vmax.xlane.f32.xlu1 %v1922_v19  ;;  %v1867_v22 = vpop.f32.mrf.mxu0 }
 0x331   : > { %v1914_v23 = vadd.f32 %v1913_v20, %v927_v6  ;;  %v1868_v24 = vadd.f32 %v1867_v22, %v927_v6  ;;  %v2256_v22 = vsel %vm1974_vm4, %v993_v18, 0 }
 0x332   : > { %v3073_v25 = vpop.f32.mrf.mxu0  ;;  %v3079_v26 = vpop.f32.mrf.mxu1 }
 0x333   : > { %v1928_v27 = vsel %vm1734_vm3, %v1914_v23, -inf  ;;  %v1925_v28 = vsel %vm1734_vm3, %v1868_v24, -inf }
 0x334   : > { %v1916_v29 = vpop.f32.mrf.mxu1  ;;  %1929 = vmax.xlane.f32.xlu1 %v1928_v27  ;;  %1926 = vmax.xlane.f32.xlu0 %v1925_v28  ;;  %v1870_v30 = vpop.f32.mrf.mxu0 }
 0x336   : > { %v3074_v31 = vpop.f32.mrf.mxu0  ;;  %v3080_v32 = vpop.f32.mrf.mxu1 }
 0x3b5   : > { %v1921_v33 = vpop.xlane.xlu1 %1920 }
 0x3b6   : > { %v1931_v34 = vsub.f32 %v1776_v9, %v1921_v33  ;;  %v991_v9 = vld [vmem:[%s4023_s19] sm:$0xf] }
 0x3b7   : > { %v2164_v14 = vsel %vm1974_vm4, %v991_v9, 0 }
 0x3b8   : > { %v1935_v35 = vmul.f32 1.442695, %v1931_v34 }
 0x3b9   : > { %v1924_v36 = vpop.xlane.xlu1 %1923 }
 0x3ba   : > { %3250 = vpow2.f32 %v1935_v35  ;;  %v1932_v37 = vsub.f32 %v1822_v13, %v1924_v36 }
 0x3bc   : > { %v1937_v38 = vmul.f32 1.442695, %v1932_v37 }
 0x3bd   : > { %v1930_v39 = vpop.xlane.xlu1 %1929  ;;  %v1927_v40 = vpop.xlane.xlu0 %1926 }
 0x3be   : > { %3252 = vpow2.f32 %v1937_v38  ;;  %v1934_v41 = vsub.f32 %v1914_v23, %v1930_v39  ;;  %v1933_v42 = vsub.f32 %v1868_v24, %v1927_v40  ;;  %v994_v24 = vld [vmem:[%s4023_s19 + $0xc] sm:$0xf] }
 0x3bf   : > { %v2302_v28 = vsel %vm1974_vm4, %v994_v24, 0  ;;  %v2877_v24 = vld [vmem:[%s878_s12] ss:$0 sm:$0xff] }
 0x3c0   : > { %v1941_v43 = vmul.f32 1.442695, %v1934_v41  ;;  %v1939_v44 = vmul.f32 1.442695, %v1933_v42 }
 0x3c2   : > { %3254 = vpow2.f32 %v1941_v43 }
 0x3c3   : > { %3256 = vpow2.f32 %v1939_v44 }
 0x3c7   : > { %v3251_v45 = vpop.eup %3250 }
 0x3c8   : > { %v1943_v46 = vsel %vm1734_vm3, %v3251_v45, 0.0 }
 0x3c9   : > { %1944 = vadd.xlane.f32.xlu0 %v1943_v46 }
 0x3cb   : > { %v3253_v47 = vpop.eup %3252 }
 0x3cc   : > { %v1946_v48 = vsel %vm1734_vm3, %v3253_v47, 0.0 }
 0x3cd   : > { %1947 = vadd.xlane.f32.xlu1 %v1946_v48 }
 0x3cf   : > { %v3255_v49 = vpop.eup %3254 }
 0x3d0   : > { %v3257_v50 = vpop.eup %3256  ;;  %v1952_v51 = vsel %vm1734_vm3, %v3255_v49, 0.0 }
 0x3d1   : > { %1953 = vadd.xlane.f32.xlu1 %v1952_v51  ;;  %v1949_v52 = vsel %vm1734_vm3, %v3257_v50, 0.0 }
 0x3d2   : > { %1950 = vadd.xlane.f32.xlu0 %v1949_v52 }
 0x452   : > { %v1945_v53 = vpop.xlane.xlu0 %1944 }
 0x453   : > { %3258 = vrcp.f32 %v1945_v53 }
 0x456   : > { %v1948_v54 = vpop.xlane.xlu1 %1947 }
 0x457   : > { %3260 = vrcp.f32 %v1948_v54 }
 0x45a   : > { %v1954_v56 = vpop.xlane.xlu1 %1953 }
 0x45b   : > { %3262 = vrcp.f32 %v1954_v56  ;;  %v1951_v57 = vpop.xlane.xlu0 %1950 }
 0x45c   : > { %3264 = vrcp.f32 %v1951_v57 }
 0x460   : > { %v3259_v60 = vpop.eup %3258 }
 0x461   : > { %v1959_v1 = vmul.f32 %v3259_v60, %v3251_v45 }
 0x463   : > { %v1963_v2 = vpack.c.bf16 %v1959_v1, %v1959_v1 }
 0x464   : > { %v3261_v3 = vpop.eup %3260 }
 0x465   : > { %3084 = vmatmul.mubr.msk.bf16.vlgmr.msra.gmra.mxu0 %vm1734_vm3, %v1963_v2  ;;  %v1960_v6 = vmul.f32 %v3261_v3, %v3253_v47 }
 0x466   : > { %3094 = vmatpush3.bf16.msra.mxu0 %v2068_v4  ;;  %3095 = vmatprep.mubr.msk.bf16.mxu0 %vm3365_vm2, %v3364_v10 }
 0x467   : > { %v1964_v62 = vpack.c.bf16 %v1960_v6, %v1960_v6  ;;  %3105 = vmatprep.subr.bf16.mxu0 %v3364_v10 }
 0x468   : > { %v3263_v7 = vpop.eup %3262 }
 0x469   : > { %v3265_v8 = vpop.eup %3264  ;;  %3090 = vmatmul.mubr.msk.bf16.vlgmr.msra.gmra.mxu1 %vm1734_vm3, %v1964_v62  ;;  %v1962_v12 = vmul.f32 %v3263_v7, %v3255_v49 }
 0x46a   : > { %3100 = vmatpush3.bf16.msra.mxu1 %v2114_v63  ;;  %v1961_v11 = vmul.f32 %v3265_v8, %v3257_v50  ;;  %3101 = vmatprep.mubr.msk.bf16.mxu1 %vm3365_vm2, %v3364_v10  ;;  %v3244_v8 = vld [vmem:[%s3617_s10 + $0x8] sm:$0xff]   ;;  %v3245_v63 = vld [vmem:[%s3617_s10] sm:$0xff]  }
 0x46b   : > { %3111 = vmatprep.subr.bf16.mxu1 %v3364_v10  ;;  %v1966_v15 = vpack.c.bf16 %v1962_v12, %v1962_v12 }
 0x46c   : > { %v1965_v13 = vpack.c.bf16 %v1961_v11, %v1961_v11 }
 0x46e   : > { %3096 = vmatmul.mubr.msk.bf16.vlgmr.msra.gmra.mxu0 %vm1734_vm3, %v1965_v13  ;;  %v2875_v13 = vld [vmem:[%s4028_s20] ss:$0 sm:$0xff] }
 0x46f   : > { %3106 = vmatpush3.bf16.msra.mxu0 %v2164_v14  ;;  %3107 = vmatprep.mubr.msk.bf16.mxu0 %vm3365_vm2, %v3364_v10 }
 0x470   : > { %3117 = vmatprep.subr.bf16.mxu0 %v3364_v10 }
 0x471   : > { %3102 = vmatmul.mubr.msk.bf16.vlgmr.msra.gmra.mxu1 %vm1734_vm3, %v1966_v15  ;;  %v2876_v15 = vld [vmem:[%s870_s28] ss:$0 sm:$0xff] }
 0x472   : > { %3113 = vmatprep.mubr.msk.bf16.mxu1 %vm3365_vm2, %v3364_v10  ;;  %3112 = vmatpush3.bf16.msra.mxu1 %v2210_v17 }
 0x473   : > { %3123 = vmatprep.subr.bf16.mxu1 %v3364_v10 }
 0x525   : > { %v2012_v19 = vpop.f32.mrf.mxu0 }
 0x526   : > { %v2156_v20 = vpack.c.bf16 %v2012_v19, %v2012_v19  ;;  %v3246_v19 = vld [vmem:[%s3626_s18 + $0x8] sm:$0xff]  }
 0x527   : > { %v3085_v23 = vpop.f32.mrf.mxu0 }
 0x528   : > { %3108 = vmatmul.mubr.msk.bf16.vlgmr.msra.gmra.mxu0 %vm1734_vm3, %v2156_v20  ;;  %v3247_v20 = vld [vmem:[%s3626_s18] sm:$0xff]   ;;  %v3366_v23 = vmov 0  }
 0x529   : > { %v2015_v25 = vpop.f32.mrf.mxu0  ;;  %v2058_v26 = vpop.f32.mrf.mxu1  ;;  %3118 = vmatpush3.bf16.msra.mxu0 %v2256_v22  ;;  %3119 = vmatprep.mubr.msk.bf16.mxu0 %vm3365_vm2, %v3364_v10  ;;  %v928_v22 = vld [vmem:[%s4026_s11] sm:$0xff] }
 0x52a   : > { %v2157_v27 = vpack.c.bf16 %v2058_v26, %v2058_v26  ;;  %3129 = vmatprep.subr.bf16.mxu0 %v3364_v10  ;;  %3219 = vset.pattern.permute.xlu0 %v3366_v23 }
 0x52b   : > { %v3086_v29 = vpop.f32.mrf.mxu0  ;;  %v3091_v30 = vpop.f32.mrf.mxu1 }
 0x52c   : > { %3114 = vmatmul.mubr.msk.bf16.vlgmr.msra.gmra.mxu1 %vm1734_vm3, %v2157_v27 }
 0x52d   : > { %v2061_v31 = vpop.f32.mrf.mxu1  ;;  %3124 = vmatpush3.bf16.msra.mxu1 %v2302_v28  ;;  %3125 = vmatprep.mubr.msk.bf16.mxu1 %vm3365_vm2, %v3364_v10 }
 0x52e   : > { %v2104_v32 = vpop.f32.mrf.mxu0  ;;  %3137 = vmatprep.subr.bf16.mxu1 %v3364_v10 }
 0x52f   : > { %v2158_v33 = vpack.c.bf16 %v2104_v32, %v2104_v32  ;;  %v3092_v34 = vpop.f32.mrf.mxu1 }
 0x530   : > { %v3097_v35 = vpop.f32.mrf.mxu0 }
 0x531   : > { %3120 = vmatmul.mubr.msk.bf16.vlgmr.msra.gmra.mxu0 %vm1734_vm3, %v2158_v33  ;;  %v2150_v36 = vpop.f32.mrf.mxu1 }
 0x532   : > { %v2107_v37 = vpop.f32.mrf.mxu0  ;;  %v2159_v38 = vpack.c.bf16 %v2150_v36, %v2150_v36  ;;  %3133 = vmatprep.mubr.msk.bf16.mxu0 %vm3365_vm2, %v3364_v10  ;;  %3130 = vmatpush3.bf16.msra.mxu0 %v3244_v8 }
 0x533   : > { %v3103_v39 = vpop.f32.mrf.mxu1  ;;  %3131 = vmatprep.subr.bf16.mxu0 %v3364_v10 }
 0x534   : > { %v3098_v40 = vpop.f32.mrf.mxu0  ;;  %3126 = vmatmul.mubr.msk.bf16.vlgmr.msra.gmra.mxu1 %vm1734_vm3, %v2159_v38  ;;  %v2881_v39 = vld [vmem:[%s886_s13] ss:$0 sm:$0xff] }
 0x535   : > { %v2153_v41 = vpop.f32.mrf.mxu1  ;;  %3141 = vmatprep.mubr.msk.bf16.mxu1 %vm3365_vm2, %v3364_v10  ;;  %3138 = vmatpush3.bf16.msra.mxu1 %v3246_v19 }
 0x536   : > { %3132 = vmatpush3.bf16.msra.mxu0 %v3245_v63  ;;  %3139 = vmatprep.subr.bf16.mxu1 %v3364_v10 }
 0x537   : > { %v3104_v42 = vpop.f32.mrf.mxu1 }
 0x539   : > { %3140 = vmatpush3.bf16.msra.mxu1 %v3247_v20 }
 0x5e8   : > { %v2200_v43 = vpop.f32.mrf.mxu0 }
 0x5ea   : > { %v3109_v44 = vpop.f32.mrf.mxu0 }
 0x5ec   : > { %v2203_v45 = vpop.f32.mrf.mxu0  ;;  %v2246_v46 = vpop.f32.mrf.mxu1 }
 0x5ed   : > { %v2344_v50 = vadd.f32 %v2246_v46, %v2200_v43 }
 0x5ee   : > { %v3110_v47 = vpop.f32.mrf.mxu0  ;;  %v3115_v48 = vpop.f32.mrf.mxu1 }
 0x5f0   : > { %v2249_v49 = vpop.f32.mrf.mxu1 }
 0x5f1   : > { %v2292_v51 = vpop.f32.mrf.mxu0 }
 0x5f2   : > { %v3116_v52 = vpop.f32.mrf.mxu1  ;;  %v2345_v53 = vadd.f32 %v2344_v50, %v2292_v51 }
 0x5f3   : > { %v3121_v54 = vpop.f32.mrf.mxu0 }
 0x5f4   : > { %v2338_v56 = vpop.f32.mrf.mxu1 }
 0x5f5   : > { %v2295_v57 = vpop.f32.mrf.mxu0  ;;  %v2346_v58 = vadd.f32 %v2345_v53, %v2338_v56 }
 0x5f6   : > { %v3127_v59 = vpop.f32.mrf.mxu1 }
 0x5f7   : > { %v2353_v60 = vadd.f32 %v2874_v55, %v2346_v58  ;;  %v3122_v61 = vpop.f32.mrf.mxu0 }
 0x5f8   : > { %v2341_v0 = vpop.f32.mrf.mxu1 }
 0x5f9   : > { %v2354_v1 = vadd.f32 %v2353_v60, %v3660_v21 }
 0x5fa   : > { %v3128_v2 = vpop.f32.mrf.mxu1 }
 0x5fb   : > { %v2355_v3 = vsel %vm898_vm1, %v2354_v1, 0.0 }
 0x5fc   : > { %2356 = vadd.xlane.f32.xlu0 %v2355_v3 }
 0x612   : > { %2518 = vperm.xlu0 %3219, %v928_v22  }
 0x685   : > { %v2357_v4 = vpop.xlane.xlu0 %2356 }
 0x686   : > { %v2358_v5 = vmul.f32 0.03125, %v2357_v4 }
 0x688   : > { %v2359_v6 = vsub.f32 %v2354_v1, %v2358_v5 }
 0x68a   : > { %v2360_v62 = vmul.f32 %v2359_v6, %v2359_v6 }
 0x68c   : > { %v2361_v7 = vsel %vm898_vm1, %v2360_v62, 0.0 }
 0x68d   : > { %2362 = vadd.xlane.f32.xlu1 %v2361_v7  ;;  %v2519_v43 = vpop.permute.xlu0 %2518 }
 0x716   : > { %v2363_v21 = vpop.xlane.xlu1 %2362 }
 0x717   : > { %v2364_v9 = vmul.f32 0.03125, %v2363_v21 }
 0x719   : > { %v2365_v11 = vadd.f32 1e-08, %v2364_v9 }
 0x71b   : > { %3266 = vrsqrt.f32 %v2365_v11 }
 0x728   : > { %v3267_v12 = vpop.eup %3266 }
 0x729   : > { %v2367_v14 = vmul.f32 %v3267_v12, %v2359_v6 }
 0x72b   : > { %v2374_v16 = vmul.f32 %v2875_v13, %v2367_v14 }
 0x72d   : > { %v2381_v17 = vadd.f32 %v2876_v15, %v2374_v16 }
 0x72f   : > { %v2382_v18 = vpack.c.bf16 %v2381_v17, %v2381_v17 }
 0x731   : > { %3134 = vmatmul.mubr.msk.bf16.vlgmr.msra.gmra.mxu0 %vm898_vm1, %v2382_v18 }
 0x7f1   : > { %v2438_v25 = vpop.f32.mrf.mxu0 }
 0x7f2   : > { %v2439_v26 = vadd.f32 %v2877_v24, %v2438_v25 }
 0x7f3   : > { %v3135_v27 = vpop.f32.mrf.mxu0 }
 0x7f4   : > { %v2445_v28 = vmul.f32 %v2439_v26, %v2439_v26  ;;  %v2444_v35 = vmul.f32 0.5, %v2439_v26 }
 0x7f5   : > { %v2441_v29 = vpop.f32.mrf.mxu0 }
 0x7f6   : > { %v2446_v30 = vmul.f32 %v2445_v28, %v2439_v26 }
 0x7f7   : > { %v3136_v31 = vpop.f32.mrf.mxu0 }
 0x7f8   : > { %v2447_v10 = vmul.f32 0.044715, %v2446_v30 }
 0x7fa   : > { %v2448_v32 = vadd.f32 %v2447_v10, %v2439_v26 }
 0x7fc   : > { %v2449_v33 = vmul.f32 0.7978846, %v2448_v32 }
 0x7fe   : > { %3268 = vtanh.f32 %v2449_v33 }
 0x80b   : > { %v3269_v34 = vpop.eup %3268 }
 0x80c   : > { %v2451_v36 = vadd.f32 1.0, %v3269_v34 }
 0x80e   : > { %v2452_v37 = vmul.f32 %v2451_v36, %v2444_v35 }
 0x810   : > { %v2453_v38 = vpack.c.bf16 %v2452_v37, %v2452_v37 }
 0x812   : > { %3142 = vmatmul.mubr.msk.bf16.vlgmr.msra.gmra.mxu1 %vm898_vm1, %v2453_v38 }
 0x8d2   : > { %v2509_v40 = vpop.f32.mrf.mxu1 }
 0x8d3   : > { %v2510_v41 = vadd.f32 %v2881_v39, %v2509_v40 }
 0x8d4   : > { %v3143_v42 = vpop.f32.mrf.mxu1 }
 0x8d5   : > { %v2515_v44 = vadd.f32 %v2510_v41, %v2381_v17  ;;  %2526 = sbr.rel (%p2885_p1) target bundleno = 2267 (0x8db), region = 104 }
 0x8d6   : > { %v2512_v45 = vpop.f32.mrf.mxu1 }
 0x8d7   : > { %v2521_v46 = vmul.f32 %v2519_v43, %v2515_v44 }
 0x8d8   : > { %v3144_v47 = vpop.f32.mrf.mxu1 }
 0x8d9   : > { %2522 = vst.msk [vmem:[#allocation2] sm:$0xff] %vm898_vm1, %v2521_v46 }
 0x8da   : > { %2527 = vst.msk [vmem:[%s818_s15] sm:$0xff] %vm898_vm1, %v2521_v46 }
 0x8db PF: > { %s4032_s0 = sld [smem:[#allocation10_spill]]  ;;  %s2542_s2 = sshll.u32 %s818_s15, 4  ;;  %s2543_s2 = int_to_ptr.vmem [resolvable:$true] %s2542_s2 }
 0x8dc   : > { %s4033_s13 = sld [smem:[#allocation7_spill]]  ;;  %s3270_s11 = scalar_lea.vmem %s2543_s2, 128 }
 0x8dd   : > { %s4035_s19 = sld [smem:[#allocation36_spill]]  ;;  %p3271_p2 = scmp.ne.s32.totalorder %s2543_s2, %s3270_s11 }
 0x8de   : > { %s3367_s25 = smov [#allocation3]  }
 0x8df   : > { %p3272_p4 = pnand %p3271_p2, %p3517_p3  ;;  %s3274_s30 = sshll.u32 %s3367_s25, 4  ;;  %s3275_s30 = int_to_ptr.vmem [resolvable:$false] %s3274_s30 }
 0x8e0   : > { %s3276_s26 = scalar_lea.vmem %s3275_s30, 256  ;;  %p3277_p6 = scmp.lt.s32.totalorder %s2543_s2, %s3275_s30 }
 0x8e1   : > { %s2887_s29 = sshll.u32 %s4032_s0, 7  ;;  %p3273_p5 = pneg %p3272_p4 }
 0x8e2   : > { %s4036_s7 = sand.u32 1, %s4033_s13   ;;  %p3278_p7 = scmp.lt.s32.totalorder %s3276_s26, %s3270_s11 }
 0x8e3   : > { %s2540_s21 = scalar_lea.hbm %s4035_s19, %s2887_s29  ;;  %s2529_s9 = scalar_lea.sflag [#allocation4], %s4036_s7 }
 0x8e4   : > { %p3279_p8 = por %p3278_p7, %p3277_p6 }
 0x8e6   : > { %p3280_p10 = pnand %p3279_p8, %p3273_p5 }
 0x8e8   : > { %3283 = shalt.err (!%p3280_p10)
}
 0x8e9   : > { %s3284_s20 = scalar_lea.hbm %s2540_s21, 128  ;;  %s3288_s16 = scalar_lea.hbm %s4035_s19, 256 }
 0x8ea   : > { %p3285_p11 = scmp.ne.s32.totalorder %s2540_s21, %s3284_s20  ;;  %p3289_p0 = scmp.lt.s32.totalorder %s2540_s21, %s4035_s19 }
 0x8eb   : > { %p3290_p1 = scmp.lt.s32.totalorder %s3288_s16, %s3284_s20 }
 0x8ec   : > { %p3286_p12 = pnand %p3285_p11, %p3517_p3 }
 0x8ed   : > { %p3291_p2 = por %p3290_p1, %p3289_p0 }
 0x8ee   : > { %p3287_p13 = pneg %p3286_p12 }
 0x8f0   : > { %p3292_p4 = pnand %p3291_p2, %p3287_p13 }
 0x8f2   : > { %3295 = shalt.err (!%p3292_p4)
}
 0x8f3   : > { %3145 = dma.vmem_to_hbm [thread:$0]  (%p3517_p3), %s2543_s2, 128, %s2540_s21, %s2529_s9  }
 0x8f4 PF: > { %s4037_s27 = sld [smem:[#allocation13_spill]] }
 0x8f5   : > { %s4038_s1 = sld [smem:[#allocation6_spill]] }
 0x8fa   : > { %p3151_p5 = scmp.ge.s32.totalorder %s4037_s27, 2 }
 0x8fb   : > { %s2554_s18 = sand.u32 1, %s4038_s1  }
 0x8fc   : > { %p3148_p6 = pnand %p3151_p5, %p3527_p9  ;;  %s2555_s28 = scalar_lea.sflag [#allocation4], %s2554_s18 }
 0x8fe   : > { %p3149_p7 = pneg %p3148_p6 }
 0x900   : > { %3329 = dma.done.wait (%p3149_p7), %s2555_s28, 128  }
 0x901   : > { %3331 = vsyncadd (%p3149_p7), %s2555_s28, 4294967168  ;;  %s32_s23 = sadd.s32 1, %s4037_s27   ;;  %s4040_s0 = sld [smem:[#allocation7_spill]] }
 0x902   : > { %p29_p8 = scmp.ge.s32.totalorder %s32_s23, 6   ;;  %s4041_s30 = sld [smem:[#allocation8_spill]] }
 0x903   : > { %s4042_s20 = sld [smem:[#allocation18_spill]] }
 0x904   : > { %s4043_s21 = sld [smem:[#allocation11_spill]]  ;;  %31 = sbr.rel (!%p29_p8) target bundleno = 22 (0x16), region = 190 }
 0x905   : > { %s4044_s1 = sld [smem:[#allocation12_spill]] }
 0x906   : > { %s4045_s22 = sld [smem:[#allocation14_spill]] }
 0x907   : > { %s4046_s2 = sld [smem:[#allocation16_spill]] }
 0x909   :  { %2560 = vsyncpa [#allocation4], 1 }
 0x90a   :  { %2562 = vsyncpa [#allocation4 + $0x1], 1 }

// kernel: crossmodal_transformer_forward.2
= control target key start
LH: loop header
LB: loop body
LE: loop exit
PB: predicated region body
PF: predicated region fallthrough
CT: control target
= control target key end

     0   :  { %s2558_s22 = smov 0   ;;  %s2560_s23 = smov 0   ;;  %s2788_s0 = inlined_call_operand.vmem [shape: f32[2,8,32], index: 0, kind: input, shape index: {}]   ;;  %s2789_s1 = inlined_call_operand.vmem [shape: f32[2,8,32], index: 1, kind: input, shape index: {}]   ;;  %s2790_s2 = inlined_call_operand.vmem [shape: f32[8,8], index: 2, kind: input, shape index: {}]   ;;  %s2791_s3 = inlined_call_operand.vmem [shape: f32[2,8,1], index: 3, kind: input, shape index: {}]   ;;  %s2792_s4 = inlined_call_operand.vmem [shape: f32[1,32], index: 4, kind: input, shape index: {}]   ;;  %s2793_s5 = inlined_call_operand.vmem [shape: f32[1,32], index: 5, kind: input, shape index: {}]   ;;  %s2794_s6 = inlined_call_operand.vmem [shape: f32[1,1,32], index: 6, kind: input, shape index: {}]   ;;  %s2795_s7 = inlined_call_operand.vmem [shape: f32[1,1,32], index: 7, kind: input, shape index: {}]   ;;  %s2796_s8 = inlined_call_operand.vmem [shape: bf16[1,2,32,16], index: 8, kind: input, shape index: {}]   ;;  %s2797_s9 = inlined_call_operand.vmem [shape: f32[1,2,1,16], index: 9, kind: input, shape index: {}]   ;;  %s2798_s10 = inlined_call_operand.vmem [shape: bf16[1,4,32,16], index: 10, kind: input, shape index: {}]   ;;  %s2799_s11 = inlined_call_operand.vmem [shape: f32[1,4,1,16], index: 11, kind: input, shape index: {}]   ;;  %s2800_s12 = inlined_call_operand.vmem [shape: bf16[1,2,16,32], index: 12, kind: input, shape index: {}]   ;;  %s2801_s13 = inlined_call_operand.vmem [shape: f32[1,1,32], index: 13, kind: input, shape index: {}]   ;;  %s2802_s14 = inlined_call_operand.vmem [shape: f32[1,1,32], index: 14, kind: input, shape index: {}]   ;;  %s2803_s15 = inlined_call_operand.vmem [shape: f32[1,1,32], index: 15, kind: input, shape index: {}]   ;;  %s2804_s16 = inlined_call_operand.vmem [shape: bf16[1,32,32], index: 16, kind: input, shape index: {}]   ;;  %s2805_s17 = inlined_call_operand.vmem [shape: f32[1,1,32], index: 17, kind: input, shape index: {}]   ;;  %s2806_s18 = inlined_call_operand.vmem [shape: bf16[1,32,32], index: 18, kind: input, shape index: {}]   ;;  %s2807_s19 = inlined_call_operand.vmem [shape: f32[1,1,32], index: 19, kind: input, shape index: {}]   ;;  %s2808_s20 = inlined_call_operand.vmem [shape: f32[2,8,32], index: 20, kind: output, shape index: {}]  }
   0x1   :  { %2809 = sst [smem:[#allocation4_spill]] %s2788_s0 }
   0x2   :  { %2810 = sst [smem:[#allocation5_spill]] %s2789_s1  ;;  %s2556_s1 = smov 0  }
   0x3   :  { %2811 = sst [smem:[#allocation6_spill]] %s2790_s2 }
   0x4   :  { %2812 = sst [smem:[#allocation7_spill]] %s2791_s3 }
   0x5   :  { %2813 = sst [smem:[#allocation8_spill]] %s2792_s4 }
   0x6 LB: > { %s42_s24 = sadd.s32 1, %s2442_s22  ;;  %p2172_p0 = scmp.ge.s32.totalorder %s2446_s23, 1  ;;  %s2446_s23 = sphi %s2560_s23, %s30_s23   ;;  %s2442_s22 = sphi %s2558_s22, %s2820_s22   ;;  %s2438_s1 = sphi %s2556_s1, %s2819_s1  }
   0x7   : > { %p44_p1 = scmp.ge.s32.totalorder %s42_s24, 2  ;;  %p715_p2 = scmp.lt.s32.totalorder %s2446_s23, 3 }
   0x9   : > { %s2822_s24 = smov (%p44_p1, %s42_s24), 0  ;;  %p716_p3 = pnand %p2172_p0, %p715_p2 }
   0xa   : > { %p833_p4 = scmp.lt.s32.totalorder (!%p716_p3), %s2438_s1, 1  ;;  %s2814_s26 = sld [smem:[#allocation5_spill]] (!%p716_p3) }
   0xb   : > { %719 = sbr.rel (%p716_p3) target bundleno = 2191 (0x88f), region = 100  ;;  %s2815_s29 = sld [smem:[#allocation4_spill]] (!%p716_p3) }
   0xc   : > { %s2817_s25 = sld [smem:[#allocation6_spill]] (!%p716_p3) }
  0x10   : > { %s2824_s1 = smov (!%p833_p4, %s2438_s1), 1  ;;  %vm909_vm0 = vcmask 261120   ;;  %v2390_v15 = vld [vmem:[%s2796_s8 + $0x8] sm:$0xff]   ;;  %v2391_v16 = vld [vmem:[%s2796_s8 + $0x18] sm:$0xff]   ;;  %v2448_v17 = vmov 0.0   ;;  %v2392_v18 = vld [vmem:[%s2796_s8] sm:$0xff]  }
  0x11   : > { %s2574_s2 = sshll.u32 %s2824_s1, 3  ;;  %2262 = vmatprep.subr.bf16.mxu0 %v2448_v17  ;;  %2270 = vmatprep.subr.bf16.mxu1 %v2448_v17  ;;  %v2393_v19 = vld [vmem:[%s2796_s8 + $0x10] sm:$0xff]   ;;  %vm2449_vm1 = vmmov 0   ;;  %v2178_v29 = vld [vmem:[%s2793_s5] ss:$0 sm:$0xff]  ;;  %v2394_v38 = vld [vmem:[%s2798_s10 + $0x8] sm:$0xff]  }
  0x12   : > { %s840_s27 = scalar_lea.vmem %s2814_s26, %s2574_s2  ;;  %s836_s30 = scalar_lea.vmem %s2815_s29, %s2574_s2  ;;  %2263 = vmatpush3.bf16.msra.mxu0 %v2390_v15  ;;  %2271 = vmatpush3.bf16.msra.mxu1 %v2391_v16  ;;  %v2179_v33 = vld [vmem:[%s2794_s6] ss:$0 sm:$0xff]  ;;  %v2395_v39 = vld [vmem:[%s2798_s10 + $0x18] sm:$0xff]   ;;  %v2397_v42 = vld [vmem:[%s2798_s10 + $0x10] sm:$0xff]   ;;  %vm1385_vm2 = vcmask 130048   ;;  %vm1508_vm3 = vcmask 1043456  }
  0x13   : > { %v911_v0 = vld [vmem:[%s840_s27] sm:$0xff]  ;;  %2264 = vmatprep.subr.bf16.mxu0 %v2448_v17  ;;  %2272 = vmatprep.subr.bf16.mxu1 %v2448_v17  ;;  %v2398_v44 = vld [vmem:[%s2798_s10 + $0x28] sm:$0xff]   ;;  %v2399_v45 = vld [vmem:[%s2798_s10 + $0x38] sm:$0xff]   ;;  %vm1478_vm4 = vcmask 64512   ;;  %s2818_s1 = sld [smem:[#allocation7_spill]] }
  0x14   : > { %v908_v1 = vld [vmem:[%s836_s30] sm:$0xff]  ;;  %v914_v2 = vsel %vm909_vm0, %v911_v0, 0.0  ;;  %2266 = vmatprep.mubr.msk.bf16.mxu0 %vm2449_vm1, %v2448_v17  ;;  %2274 = vmatprep.mubr.msk.bf16.mxu1 %vm2449_vm1, %v2448_v17  ;;  %s2816_s30 = sld [smem:[#allocation8_spill]]  ;;  %v2401_v48 = vld [vmem:[%s2798_s10 + $0x30] sm:$0xff]  }
  0x15   : > { %910 = vst.msk [vmem:[#allocation2] sm:$0xff] %vm909_vm0, %v908_v1  ;;  %915 = vadd.xlane.f32.xlu0 %v914_v2  ;;  %v2180_v35 = vld [vmem:[%s2795_s7] ss:$0 sm:$0xff]  ;;  %v2190_v58 = vld [vmem:[%s2799_s11 + $0x1] ss:$0 sm:$0xff] }
  0x16   : > { %2265 = vmatpush3.bf16.msra.mxu0 %v2392_v18  ;;  %2273 = vmatpush3.bf16.msra.mxu1 %v2393_v19  ;;  %v2396_v41 = vld [vmem:[%s2798_s10] sm:$0xff]  }
  0x17   : > { %2278 = vmatprep.subr.bf16.mxu0 %v2448_v17  ;;  %2286 = vmatprep.subr.bf16.mxu1 %v2448_v17  ;;  %v2400_v47 = vld [vmem:[%s2798_s10 + $0x20] sm:$0xff]  }
  0x18   : > { %v2189_v57 = vld [vmem:[%s2799_s11] ss:$0 sm:$0xff] }
  0x1a   : > { %v2177_v27 = vld [vmem:[%s2816_s30] ss:$0 sm:$0xff]  ;;  %s902_s30 = scalar_lea.vmem %s2808_s20, %s2574_s2 }
  0x1c   : > { %v943_v3 = vld [vmem:[#allocation2] sm:$0xff] }
  0x1d   : > { %v997_v4 = vsel %vm909_vm0, %v943_v3, 0.0 }
  0x1e   : > { %998 = vadd.xlane.f32.xlu0 %v997_v4  ;;  %v2182_v4 = vld [vmem:[%s2797_s9 + $0x1] ss:$0 sm:$0xff] }
  0x9e   : > { %v916_v5 = vpop.xlane.xlu0 %915 }
  0x9f   : > { %v918_v6 = vmul.f32 0.03125, %v916_v5 }
  0xa1   : > { %v919_v7 = vsub.f32 %v911_v0, %v918_v6 }
  0xa3   : > { %v920_v8 = vmul.f32 %v919_v7, %v919_v7 }
  0xa5   : > { %v921_v9 = vsel %vm909_vm0, %v920_v8, 0.0 }
  0xa6   : > { %922 = vadd.xlane.f32.xlu1 %v921_v9 }
  0xa7   : > { %v999_v10 = vpop.xlane.xlu0 %998 }
  0xa8   : > { %v1001_v11 = vmul.f32 0.03125, %v999_v10 }
  0xaa   : > { %v1002_v12 = vsub.f32 %v943_v3, %v1001_v11  ;;  %v2181_v3 = vld [vmem:[%s2797_s9] ss:$0 sm:$0xff]  ;;  %v2191_v11 = vld [vmem:[%s2799_s11 + $0x2] ss:$0 sm:$0xff] }
  0xac   : > { %v1003_v13 = vmul.f32 %v1002_v12, %v1002_v12 }
  0xae   : > { %v1004_v14 = vsel %vm909_vm0, %v1003_v13, 0.0 }
  0xaf   : > { %1005 = vadd.xlane.f32.xlu1 %v1004_v14 }
 0x12f   : > { %v923_v20 = vpop.xlane.xlu1 %922 }
 0x130   : > { %v924_v21 = vmul.f32 0.03125, %v923_v20 }
 0x132   : > { %v925_v22 = vadd.f32 1e-08, %v924_v21 }
 0x134   : > { %2408 = vrsqrt.f32 %v925_v22 }
 0x138   : > { %v1006_v23 = vpop.xlane.xlu1 %1005 }
 0x139   : > { %v1007_v24 = vmul.f32 0.03125, %v1006_v23 }
 0x13b   : > { %v1008_v25 = vadd.f32 1e-08, %v1007_v24 }
 0x13d   : > { %2410 = vrsqrt.f32 %v1008_v25 }
 0x141   : > { %v2409_v26 = vpop.eup %2408 }
 0x142   : > { %v927_v28 = vmul.f32 %v2409_v26, %v919_v7 }
 0x144   : > { %v934_v30 = vmul.f32 %v2177_v27, %v927_v28 }
 0x146   : > { %v941_v31 = vadd.f32 %v2178_v29, %v934_v30 }
 0x148   : > { %942 = vst.msk [vmem:[#allocation3] sm:$0xff] %vm909_vm0, %v941_v31 }
 0x14a   : > { %v2411_v32 = vpop.eup %2410 }
 0x14b   : > { %v1010_v34 = vmul.f32 %v2411_v32, %v1002_v12  ;;  %v2192_v12 = vld [vmem:[%s2799_s11 + $0x3] ss:$0 sm:$0xff] }
 0x14c   : > { %v945_v32 = vld [vmem:[%s2817_s25] sm:$0xff]  ;;  %s844_s25 = scalar_lea.vmem %s2818_s1, %s2574_s2 }
 0x14d   : > { %v1017_v36 = vmul.f32 %v2179_v33, %v1010_v34 }
 0x14f   : > { %v2624_v37 = vadd.f32 %v2180_v35, %v1017_v36  ;;  %v944_v43 = vld [vmem:[#allocation3] sm:$0xff] }
 0x150   : > { %v1026_v46 = vpack.c.bf16 %v944_v43, %v944_v43 }
 0x151   : > { %v1025_v40 = vpack.c.bf16 %v2624_v37, %v2624_v37 }
 0x153   : > { %2267 = vmatmul.mubr.msk.bf16.vlgmr.msra.gmra.mxu0 %vm909_vm0, %v1025_v40  ;;  %2275 = vmatmul.mubr.msk.bf16.vlgmr.msra.gmra.mxu1 %vm909_vm0, %v1025_v40 }
 0x154   : > { %2279 = vmatpush3.bf16.msra.mxu0 %v2394_v38  ;;  %2287 = vmatpush3.bf16.msra.mxu1 %v2395_v39 }
 0x155   : > { %2280 = vmatprep.subr.bf16.mxu0 %v2448_v17  ;;  %2288 = vmatprep.subr.bf16.mxu1 %v2448_v17 }
 0x156   : > { %2282 = vmatprep.mubr.msk.bf16.mxu0 %vm2449_vm1, %v2448_v17  ;;  %2290 = vmatprep.mubr.msk.bf16.mxu1 %vm2449_vm1, %v2448_v17 }
 0x158   : > { %2281 = vmatpush3.bf16.msra.mxu0 %v2396_v41  ;;  %2289 = vmatpush3.bf16.msra.mxu1 %v2397_v42 }
 0x159   : > { %2294 = vmatprep.subr.bf16.mxu0 %v2448_v17  ;;  %2302 = vmatprep.subr.bf16.mxu1 %v2448_v17 }
 0x15b   : > { %2283 = vmatmul.mubr.msk.bf16.vlgmr.msra.gmra.mxu0 %vm909_vm0, %v1026_v46  ;;  %2291 = vmatmul.mubr.msk.bf16.vlgmr.msra.gmra.mxu1 %vm909_vm0, %v1026_v46 }
 0x15c   : > { %2295 = vmatpush3.bf16.msra.mxu0 %v2398_v44  ;;  %2303 = vmatpush3.bf16.msra.mxu1 %v2399_v45 }
 0x15d   : > { %2296 = vmatprep.subr.bf16.mxu0 %v2448_v17  ;;  %2304 = vmatprep.subr.bf16.mxu1 %v2448_v17 }
 0x15e   : > { %2298 = vmatprep.mubr.msk.bf16.mxu0 %vm2449_vm1, %v2448_v17  ;;  %2306 = vmatprep.mubr.msk.bf16.mxu1 %vm2449_vm1, %v2448_v17 }
 0x160   : > { %2297 = vmatpush3.bf16.msra.mxu0 %v2400_v47  ;;  %2305 = vmatpush3.bf16.msra.mxu1 %v2401_v48 }
 0x161   : > { %2310 = vmatprep.subr.bf16.mxu0 %v2448_v17  ;;  %2316 = vmatprep.subr.bf16.mxu1 %v2448_v17 }
 0x163   : > { %2299 = vmatmul.mubr.msk.bf16.vlgmr.msra.gmra.mxu0 %vm909_vm0, %v1026_v46  ;;  %2307 = vmatmul.mubr.msk.bf16.vlgmr.msra.gmra.mxu1 %vm909_vm0, %v1026_v46 }
 0x164   : > { %2312 = vmatprep.mubr.msk.bf16.mxu0 %vm2449_vm1, %v2448_v17  ;;  %2318 = vmatprep.mubr.msk.bf16.mxu1 %vm2449_vm1, %v2448_v17 }
 0x213   : > { %v1088_v49 = vpop.f32.mrf.mxu0  ;;  %v1140_v50 = vpop.f32.mrf.mxu1 }
 0x214   : > { %v1089_v13 = vadd.f32 %v2181_v3, %v1088_v49  ;;  %v1141_v14 = vadd.f32 %v2182_v4, %v1140_v50 }
 0x215   : > { %v2268_v51 = vpop.f32.mrf.mxu0  ;;  %v2276_v52 = vpop.f32.mrf.mxu1 }
 0x216   : > { %v1381_v22 = vpack.c.bf16 %v1089_v13, %v1089_v13  ;;  %v1382_v23 = vpack.c.bf16 %v1141_v14, %v1141_v14  ;;  %v2213_v14 = vld [vmem:[%s2801_s13] ss:$0 sm:$0xff] }
 0x217   : > { %v1091_v53 = vpop.f32.mrf.mxu0  ;;  %v1143_v54 = vpop.f32.mrf.mxu1 }
 0x219   : > { %v2269_v55 = vpop.f32.mrf.mxu0  ;;  %v2277_v56 = vpop.f32.mrf.mxu1 }
 0x21b   : > { %v1219_v59 = vpop.f32.mrf.mxu0  ;;  %v1271_v60 = vpop.f32.mrf.mxu1 }
 0x21c   : > { %v1220_v61 = vadd.f32 %v2189_v57, %v1219_v59  ;;  %v1272_v62 = vadd.f32 %v2190_v58, %v1271_v60 }
 0x21d   : > { %v2284_v63 = vpop.f32.mrf.mxu0  ;;  %v2292_v0 = vpop.f32.mrf.mxu1 }
 0x21e   : > { %v1383_v1 = vpack.c.bf16 %v1220_v61, %v1220_v61  ;;  %v1384_v2 = vpack.c.bf16 %v1272_v62, %v1272_v62  ;;  %v2403_v62 = vld [vmem:[%s2800_s12 + $0x8] sm:$0xff]   ;;  %v2402_v0 = vld [vmem:[%s2800_s12] sm:$0xff]  }
 0x21f   : > { %v1222_v5 = vpop.f32.mrf.mxu0  ;;  %v1274_v6 = vpop.f32.mrf.mxu1 }
 0x220   : > { %v1390_v7 = vsel %vm1385_vm2, %v1383_v1, 0  ;;  %v1436_v8 = vsel %vm1385_vm2, %v1384_v2, 0 }
 0x221   : > { %v2285_v9 = vpop.f32.mrf.mxu0  ;;  %v2293_v10 = vpop.f32.mrf.mxu1  ;;  %2311 = vmatpush3.bf16.xpose.msra.mxu0 %v1390_v7  ;;  %2317 = vmatpush3.bf16.xpose.msra.mxu1 %v1436_v8 }
 0x222   : > { %2322 = vmatprep.subr.bf16.mxu0 %v2448_v17  ;;  %2328 = vmatprep.subr.bf16.mxu1 %v2448_v17 }
 0x223   : > { %v1323_v15 = vpop.f32.mrf.mxu0  ;;  %v1375_v16 = vpop.f32.mrf.mxu1 }
 0x224   : > { %v1324_v18 = vadd.f32 %v2191_v11, %v1323_v15  ;;  %v1376_v19 = vadd.f32 %v2192_v12, %v1375_v16 }
 0x225   : > { %v2300_v20 = vpop.f32.mrf.mxu0  ;;  %v2308_v21 = vpop.f32.mrf.mxu1 }
 0x226   : > { %v1503_v24 = vpack.c.bf16 %v1324_v18, %v1324_v18  ;;  %v1504_v25 = vpack.c.bf16 %v1376_v19, %v1376_v19 }
 0x227   : > { %v1326_v26 = vpop.f32.mrf.mxu0  ;;  %v1378_v27 = vpop.f32.mrf.mxu1 }
 0x228   : > { %v1510_v28 = vsel %vm1508_vm3, %v1503_v24, 0  ;;  %v1556_v29 = vsel %vm1508_vm3, %v1504_v25, 0  ;;  %2313 = vmatmul.mubr.msk.bf16.vlgmr.msra.gmra.mxu0 %vm1385_vm2, %v1381_v22  ;;  %2319 = vmatmul.mubr.msk.bf16.vlgmr.msra.gmra.mxu1 %vm1385_vm2, %v1382_v23 }
 0x229   : > { %v2301_v30 = vpop.f32.mrf.mxu0  ;;  %v2309_v31 = vpop.f32.mrf.mxu1  ;;  %2323 = vmatpush3.bf16.msra.mxu0 %v1510_v28  ;;  %2329 = vmatpush3.bf16.msra.mxu1 %v1556_v29 }
 0x22a   : > { %2324 = vmatprep.mubr.msk.bf16.mxu0 %vm2449_vm1, %v2448_v17  ;;  %2330 = vmatprep.mubr.msk.bf16.mxu1 %vm2449_vm1, %v2448_v17  ;;  %v2404_v31 = vld [vmem:[%s2804_s16 + $0x8] sm:$0xff]  }
 0x22b   : > { %2334 = vmatprep.subr.bf16.mxu0 %v2448_v17  ;;  %2340 = vmatprep.subr.bf16.mxu1 %v2448_v17 }
 0x2e8   : > { %v1426_v33 = vpop.f32.mrf.mxu0  ;;  %v1472_v34 = vpop.f32.mrf.mxu1 }
 0x2e9   : > { %v1427_v35 = vadd.f32 %v1426_v33, %v945_v32  ;;  %v1473_v36 = vadd.f32 %v1472_v34, %v945_v32 }
 0x2ea   : > { %v2314_v38 = vpop.f32.mrf.mxu0  ;;  %v2320_v39 = vpop.f32.mrf.mxu1 }
 0x2eb   : > { %v1482_v40 = vsel %vm1478_vm4, %v1473_v36, -inf  ;;  %v1479_v41 = vsel %vm1478_vm4, %v1427_v35, -inf  ;;  %v2215_v39 = vld [vmem:[%s2803_s15] ss:$0 sm:$0xff] }
 0x2ec   : > { %1483 = vmax.xlane.f32.xlu1 %v1482_v40  ;;  %v1475_v42 = vpop.f32.mrf.mxu1  ;;  %1480 = vmax.xlane.f32.xlu0 %v1479_v41  ;;  %v1429_v43 = vpop.f32.mrf.mxu0 }
 0x2ed   : > { %v2406_v43 = vld [vmem:[%s2806_s18 + $0x8] sm:$0xff]  }
 0x2ee   : > { %v2315_v44 = vpop.f32.mrf.mxu0  ;;  %v2321_v45 = vpop.f32.mrf.mxu1 }
 0x2ef   : > { %v2407_v44 = vld [vmem:[%s2806_s18] sm:$0xff]   ;;  %v2450_v45 = vmov 0  }
 0x2f0   : > { %2389 = vset.pattern.permute.xlu0 %v2450_v45 }
 0x375   : > { %v1484_v46 = vpop.xlane.xlu1 %1483  ;;  %v1481_v47 = vpop.xlane.xlu0 %1480 }
 0x376   : > { %v1486_v48 = vsub.f32 %v1473_v36, %v1484_v46  ;;  %v1485_v49 = vsub.f32 %v1427_v35, %v1481_v47  ;;  %v2214_v36 = vld [vmem:[%s2802_s14] ss:$0 sm:$0xff] }
 0x377   : > { %v946_v46 = vld [vmem:[%s844_s25] sm:$0xff] }
 0x378   : > { %v1489_v50 = vmul.f32 1.442695, %v1486_v48  ;;  %v1487_v51 = vmul.f32 1.442695, %v1485_v49  ;;  %v2216_v47 = vld [vmem:[%s2805_s17] ss:$0 sm:$0xff] }
 0x37a   : > { %2412 = vpow2.f32 %v1489_v50 }
 0x37b   : > { %2414 = vpow2.f32 %v1487_v51 }
 0x387   : > { %v2413_v52 = vpop.eup %2412 }
 0x388   : > { %v2415_v53 = vpop.eup %2414  ;;  %v1494_v54 = vsel %vm1478_vm4, %v2413_v52, 0.0 }
 0x389   : > { %1495 = vadd.xlane.f32.xlu1 %v1494_v54  ;;  %v1491_v55 = vsel %vm1478_vm4, %v2415_v53, 0.0 }
 0x38a   : > { %1492 = vadd.xlane.f32.xlu0 %v1491_v55 }
 0x412   : > { %v1496_v56 = vpop.xlane.xlu1 %1495 }
 0x413   : > { %2416 = vrcp.f32 %v1496_v56  ;;  %v1493_v57 = vpop.xlane.xlu0 %1492 }
 0x414   : > { %2418 = vrcp.f32 %v1493_v57 }
 0x420   : > { %v2417_v58 = vpop.eup %2416 }
 0x421   : > { %v2419_v59 = vpop.eup %2418  ;;  %v1500_v60 = vmul.f32 %v2417_v58, %v2413_v52 }
 0x422   : > { %v1499_v61 = vmul.f32 %v2419_v59, %v2415_v53 }
 0x423   : > { %v1502_v63 = vpack.c.bf16 %v1500_v60, %v1500_v60 }
 0x424   : > { %v1501_v1 = vpack.c.bf16 %v1499_v61, %v1499_v61 }
 0x425   : > { %2331 = vmatmul.mubr.msk.bf16.vlgmr.msra.gmra.mxu1 %vm1478_vm4, %v1502_v63 }
 0x426   : > { %2325 = vmatmul.mubr.msk.bf16.vlgmr.msra.gmra.mxu0 %vm1478_vm4, %v1501_v1  ;;  %2341 = vmatpush3.bf16.msra.mxu1 %v2403_v62  ;;  %v2220_v62 = vld [vmem:[%s2807_s19] ss:$0 sm:$0xff] }
 0x427   : > { %2335 = vmatpush3.bf16.msra.mxu0 %v2402_v0  ;;  %2336 = vmatprep.mubr.msk.bf16.mxu0 %vm2449_vm1, %v2448_v17 }
 0x428   : > { %2342 = vmatprep.mubr.msk.bf16.mxu1 %vm2449_vm1, %v2448_v17  ;;  %2346 = vmatprep.subr.bf16.mxu0 %v2448_v17 }
 0x429   : > { %2354 = vmatprep.subr.bf16.mxu1 %v2448_v17 }
 0x4e5   : > { %v1592_v2 = vpop.f32.mrf.mxu1 }
 0x4e6   : > { %v1546_v3 = vpop.f32.mrf.mxu0  ;;  %v1599_v4 = vpack.c.bf16 %v1592_v2, %v1592_v2 }
 0x4e7   : > { %v1598_v5 = vpack.c.bf16 %v1546_v3, %v1546_v3  ;;  %v2332_v6 = vpop.f32.mrf.mxu1 }
 0x4e8   : > { %v2326_v7 = vpop.f32.mrf.mxu0  ;;  %2343 = vmatmul.mubr.msk.bf16.vlgmr.msra.gmra.mxu1 %vm1385_vm2, %v1599_v4 }
 0x4e9   : > { %2337 = vmatmul.mubr.msk.bf16.vlgmr.msra.gmra.mxu0 %vm1385_vm2, %v1598_v5  ;;  %v1595_v8 = vpop.f32.mrf.mxu1  ;;  %2358 = vmatprep.mubr.msk.bf16.mxu1 %vm2449_vm1, %v2448_v17 }
 0x4ea   : > { %v1549_v9 = vpop.f32.mrf.mxu0  ;;  %2350 = vmatprep.mubr.msk.bf16.mxu0 %vm2449_vm1, %v2448_v17  ;;  %2347 = vmatpush3.bf16.msra.mxu0 %v2404_v31 }
 0x4eb   : > { %v2333_v10 = vpop.f32.mrf.mxu1  ;;  %2348 = vmatprep.subr.bf16.mxu0 %v2448_v17  ;;  %2355 = vmatpush3.bf16.msra.mxu1 %v2406_v43 }
 0x4ec   : > { %v2327_v11 = vpop.f32.mrf.mxu0  ;;  %2356 = vmatprep.subr.bf16.mxu1 %v2448_v17 }
 0x4ef   : > { %2357 = vmatpush3.bf16.msra.mxu1 %v2407_v44 }
 0x5a8   : > { %v1692_v12 = vpop.f32.mrf.mxu1 }
 0x5a9   : > { %v1643_v13 = vpop.f32.mrf.mxu0 }
 0x5aa   : > { %v1698_v15 = vadd.f32 %v1692_v12, %v1643_v13  ;;  %v2344_v16 = vpop.f32.mrf.mxu1 }
 0x5ab   : > { %v2338_v18 = vpop.f32.mrf.mxu0 }
 0x5ac   : > { %v1705_v19 = vadd.f32 %v2213_v14, %v1698_v15  ;;  %v1695_v20 = vpop.f32.mrf.mxu1 }
 0x5ad   : > { %v1646_v21 = vpop.f32.mrf.mxu0 }
 0x5ae   : > { %v2345_v22 = vpop.f32.mrf.mxu1  ;;  %v1706_v23 = vadd.f32 %v1705_v19, %v2624_v37  ;;  %v2405_v37 = vld [vmem:[%s2804_s16] sm:$0xff]  }
 0x5af   : > { %v2339_v24 = vpop.f32.mrf.mxu0  ;;  %2349 = vmatpush3.bf16.msra.mxu0 %v2405_v37 }
 0x5b0   : > { %v1707_v25 = vsel %vm909_vm0, %v1706_v23, 0.0 }
 0x5b1   : > { %1708 = vadd.xlane.f32.xlu0 %v1707_v25 }
 0x5c7   : > { %1870 = vperm.xlu0 %2389, %v946_v46  }
 0x63a   : > { %v1709_v26 = vpop.xlane.xlu0 %1708 }
 0x63b   : > { %v1710_v27 = vmul.f32 0.03125, %v1709_v26 }
 0x63d   : > { %v1711_v28 = vsub.f32 %v1706_v23, %v1710_v27 }
 0x63f   : > { %v1712_v29 = vmul.f32 %v1711_v28, %v1711_v28 }
 0x641   : > { %v1713_v30 = vsel %vm909_vm0, %v1712_v29, 0.0 }
 0x642   : > { %1714 = vadd.xlane.f32.xlu1 %v1713_v30  ;;  %v1871_v2 = vpop.permute.xlu0 %1870 }
 0x6cb   : > { %v1715_v32 = vpop.xlane.xlu1 %1714 }
 0x6cc   : > { %v1716_v33 = vmul.f32 0.03125, %v1715_v32 }
 0x6ce   : > { %v1717_v34 = vadd.f32 1e-08, %v1716_v33 }
 0x6d0   : > { %2420 = vrsqrt.f32 %v1717_v34 }
 0x6dd   : > { %v2421_v35 = vpop.eup %2420 }
 0x6de   : > { %v1719_v38 = vmul.f32 %v2421_v35, %v1711_v28 }
 0x6e0   : > { %v1726_v40 = vmul.f32 %v2214_v36, %v1719_v38 }
 0x6e2   : > { %v1733_v41 = vadd.f32 %v2215_v39, %v1726_v40 }
 0x6e4   : > { %v1734_v42 = vpack.c.bf16 %v1733_v41, %v1733_v41 }
 0x6e6   : > { %2351 = vmatmul.mubr.msk.bf16.vlgmr.msra.gmra.mxu0 %vm909_vm0, %v1734_v42 }
 0x7a6   : > { %v1790_v48 = vpop.f32.mrf.mxu0 }
 0x7a7   : > { %v1791_v49 = vadd.f32 %v2216_v47, %v1790_v48 }
 0x7a8   : > { %v2352_v17 = vpop.f32.mrf.mxu0 }
 0x7a9   : > { %v1797_v50 = vmul.f32 %v1791_v49, %v1791_v49  ;;  %v1796_v58 = vmul.f32 0.5, %v1791_v49 }
 0x7aa   : > { %v1793_v51 = vpop.f32.mrf.mxu0 }
 0x7ab   : > { %v1798_v52 = vmul.f32 %v1797_v50, %v1791_v49 }
 0x7ac   : > { %v2353_v53 = vpop.f32.mrf.mxu0 }
 0x7ad   : > { %v1799_v54 = vmul.f32 0.044715, %v1798_v52 }
 0x7af   : > { %v1800_v55 = vadd.f32 %v1799_v54, %v1791_v49 }
 0x7b1   : > { %v1801_v56 = vmul.f32 0.7978846, %v1800_v55 }
 0x7b3   : > { %2422 = vtanh.f32 %v1801_v56 }
 0x7c0   : > { %v2423_v57 = vpop.eup %2422 }
 0x7c1   : > { %v1803_v59 = vadd.f32 1.0, %v2423_v57 }
 0x7c3   : > { %v1804_v60 = vmul.f32 %v1803_v59, %v1796_v58 }
 0x7c5   : > { %v1805_v61 = vpack.c.bf16 %v1804_v60, %v1804_v60 }
 0x7c7   : > { %2359 = vmatmul.mubr.msk.bf16.vlgmr.msra.gmra.mxu1 %vm909_vm0, %v1805_v61 }
 0x887   : > { %v1861_v63 = vpop.f32.mrf.mxu1 }
 0x888   : > { %v1862_v0 = vadd.f32 %v2220_v62, %v1861_v63 }
 0x889   : > { %v2360_v1 = vpop.f32.mrf.mxu1 }
 0x88a   : > { %v1867_v3 = vadd.f32 %v1862_v0, %v1733_v41 }
 0x88b   : > { %v1864_v4 = vpop.f32.mrf.mxu1 }
 0x88c   : > { %v1873_v5 = vmul.f32 %v1871_v2, %v1867_v3 }
 0x88d   : > { %v2361_v6 = vpop.f32.mrf.mxu1 }
 0x88e   : > { %1874 = vst.msk [vmem:[#allocation2] sm:$0xff] %vm909_vm0, %v1873_v5  ;;  %1878 = vst.msk [vmem:[%s902_s30] sm:$0xff] %vm909_vm0, %v1873_v5 }
 0x88f PF: > { %s30_s23 = sadd.s32 1, %s2446_s23   ;;  %s2819_s1 = smov %s2442_s22 }
 0x890   : > { %p27_p5 = scmp.ge.s32.totalorder %s30_s23, 4   ;;  %s2820_s22 = smov %s2822_s24 }
 0x892   :  { %29 = sbr.rel (!%p27_p5) target bundleno = 6 (0x6), region = 186 }

</bundles_post_ra>
